<compile_context>
chip_gen: v7x
topology: tpu7x:2x2x1
jax: 0.10.0
libtpu: 0.0.40
codegen_flags: <defaults>
</compile_context>

<pallas_src>
import math

import jax
import jax.numpy as jnp
from jax.experimental import pallas as pl
from jax.experimental.pallas import tpu as pltpu

_EPS = 1e-5
_LOG2PI = math.log(2.0 * math.pi)


def _round_up(x, m):
    return ((x + m - 1) // m) * m


def _layout(H, C, N):
    """Lane offsets inside the packed output slab.

    Segment 0: obs_feat   [com | ctrl]            width 2H (128-aligned start)
    Segment 1: rnn states [ctrl | com]            width 2H (128-aligned start)
    Segment 2: small coalesced fields             width C + 2N + 2
               [mean | onehot_com | logits_com | logp_com | ent_com]
    """
    two_h = 2 * H
    seg = _round_up(two_h, 128) if two_h >= 128 else two_h
    off_obs = 0
    off_rnn = seg
    off_small = 2 * seg
    small_w = C + 2 * N + 2
    out_w = max(128, _round_up(off_small + small_w, 128))
    return dict(obs=off_obs, rnn=off_rnn, small=off_small,
                small_w=small_w, out_w=out_w)


def _ln_nogb(x):
    mu = jnp.mean(x, axis=-1, keepdims=True)
    d = x - mu
    var = jnp.mean(d * d, axis=-1, keepdims=True)
    return d * jax.lax.rsqrt(var + _EPS)


# ---------------------------------------------------------------------------
# Fused forward kernel
# ---------------------------------------------------------------------------
def _r_actor_fused_kernel(
        xin_ref,                                   # (TB, XIN_W) [obs|hc|hm|mask]
        w1_ref, b1_ref, w2_ref, b2_ref,            # MLPBase (stacked ctrl/com)
        gwc_ref, gbc_ref, glc_ref,                 # ctrl GRU
        gwm_ref, gbm_ref, glm_ref,                 # com GRU
        fn_ref, wmean_ref, bmean_ref, wcom_ref, bcom_ref,   # heads
        o_ref):
    TB = xin_ref.shape[0]
    OBS = w1_ref.shape[1]
    H = b1_ref.shape[1]
    C = wmean_ref.shape[1]
    N = wcom_ref.shape[1]
    lay = _layout(H, C, N)

    def dot(a, w_bf16):
        # bf16 MXU operands, f32 accumulation; elementwise math stays f32.
        return jnp.dot(a.astype(jnp.bfloat16), w_bf16,
                       preferred_element_type=jnp.float32)

    # ---- single dense input load, then cheap read-only lane slices ----
    xin = xin_ref[...]
    obs = xin[:, 0:OBS]
    h_ctrl0 = xin[:, OBS:OBS + H]
    h_com0 = xin[:, OBS + H:OBS + 2 * H]
    mask = xin[:, OBS + 2 * H:OBS + 2 * H + 1]

    # ---- MLPBase branches (obs LayerNorm gamma/beta folded into w1/b1) ----
    xhat = _ln_nogb(obs)

    def base(k):
        h1 = jnp.maximum(dot(xhat, w1_ref[k]) + b1_ref[k:k + 1, :], 0.0)
        return jnp.maximum(dot(h1, w2_ref[k]) + b2_ref[k:k + 1, :], 0.0)

    x_ctrl = base(0)
    x_com = base(1)

    # ---- masked single-step GRU: fused (H,3H) gate matmuls, PyTorch order ----
    def gru(x, h_prev, w_ref, b_ref, l_ref):
        h = h_prev * mask
        gi = dot(x, w_ref[0]) + b_ref[0:1, :]
        gh = dot(h, w_ref[1]) + b_ref[1:2, :]
        r = jax.nn.sigmoid(gi[:, 0:H] + gh[:, 0:H])
        z = jax.nn.sigmoid(gi[:, H:2 * H] + gh[:, H:2 * H])
        n = jnp.tanh(gi[:, 2 * H:3 * H] + r * gh[:, 2 * H:3 * H])
        h_new = (1.0 - z) * n + z * h
        # feature LayerNorm; constant id-embedding is pre-folded into l_ref[1].
        af = _ln_nogb(h_new) * l_ref[0:1, :] + l_ref[1:2, :]
        return h_new, af

    h_new_ctrl, af_ctrl = gru(x_ctrl, h_ctrl0, gwc_ref, gbc_ref, glc_ref)
    h_new_com, af_com = gru(x_com, h_com0, gwm_ref, gbm_ref, glm_ref)

    # ---- feature_norm over concat(com, ctrl) without a lane concat ----
    inv_2h = 1.0 / (2.0 * H)
    mu = (jnp.sum(af_com, axis=-1, keepdims=True)
          + jnp.sum(af_ctrl, axis=-1, keepdims=True)) * inv_2h
    d_com = af_com - mu
    d_ctrl = af_ctrl - mu
    var = (jnp.sum(d_com * d_com, axis=-1, keepdims=True)
           + jnp.sum(d_ctrl * d_ctrl, axis=-1, keepdims=True)) * inv_2h
    inv = jax.lax.rsqrt(var + _EPS)
    obsf_com = d_com * inv * fn_ref[0:1, :] + fn_ref[1:2, :]
    obsf_ctrl = d_ctrl * inv * fn_ref[2:3, :] + fn_ref[3:4, :]

    # ---- act_ctrl: DiagGaussian head (deterministic: action == mean) ----
    mean = dot(af_ctrl, wmean_ref[...]) + bmean_ref[...]

    # ---- act_com: Categorical head (deterministic: argmax one-hot) ----
    logits_com = dot(af_com, wcom_ref[...]) + bcom_ref[...]
    lmax = jnp.max(logits_com, axis=-1, keepdims=True)
    lse = jnp.log(jnp.sum(jnp.exp(logits_com - lmax), axis=-1,
                          keepdims=True)) + lmax
    logp_all = logits_com - lse
    probs = jnp.exp(logp_all)
    # first-max one-hot without an argmax reduce (max/min/where only)
    col = jax.lax.broadcasted_iota(jnp.int32, (TB, N), 1)
    first_idx = jnp.min(jnp.where(logits_com >= lmax, col, N),
                        axis=-1, keepdims=True)
    onehot = (col == first_idx).astype(jnp.float32)
    logp_com = lmax - lse
    ent_com = -jnp.sum(probs * logp_all, axis=-1, keepdims=True)

    # ---- stores: two wide aligned segments + ONE coalesced small store ----
    o_ref[:, lay["obs"]:lay["obs"] + H] = obsf_com
    o_ref[:, lay["obs"] + H:lay["obs"] + 2 * H] = obsf_ctrl
    o_ref[:, lay["rnn"]:lay["rnn"] + H] = h_new_ctrl
    o_ref[:, lay["rnn"] + H:lay["rnn"] + 2 * H] = h_new_com
    small = jnp.concatenate([mean, onehot, logits_com, logp_com, ent_com],
                            axis=-1)
    o_ref[:, lay["small"]:lay["small"] + lay["small_w"]] = small


# ---------------------------------------------------------------------------
# Parameter re-packing (trace time, plain JAX): fold LayerNorm gamma/beta into
# the first linear layer, fold the constant id-embedding into the GRU feature
# LayerNorm beta, stack per-branch weights, cast matmul weights to bf16.
# ---------------------------------------------------------------------------
def _pack_params(p, hidden, num_agents, agent_id):
    H = hidden
    bf16 = jnp.bfloat16

    def ln(x, g, b):
        mu = x.mean(-1, keepdims=True)
        v = ((x - mu) ** 2).mean(-1, keepdims=True)
        return (x - mu) / jnp.sqrt(v + _EPS) * g + b

    def fold(pp):
        w1p = pp["w1"] * pp["ln_g"].reshape(-1, 1)
        b1p = pp["b1"] + pp["ln_b"] @ pp["w1"]
        return w1p, b1p

    bc, bm = p["base_ctrl"], p["base_com"]
    w1c, b1c = fold(bc)
    w1m, b1m = fold(bm)
    w1s = jnp.stack([w1c, w1m], axis=0).astype(bf16)              # (2, OBS, H)
    b1s = jnp.concatenate([b1c, b1m], axis=0)                     # (2, H)
    w2s = jnp.stack([bc["w2"], bm["w2"]], axis=0).astype(bf16)    # (2, H, H)
    b2s = jnp.concatenate([bc["b2"], bm["b2"]], axis=0)           # (2, H)

    # Constant id-embedding (depends only on params / agent one-hot): compute
    # here and fold into GRU LN beta, since af = LN(h_new)*g + (b + id_embed).
    ab = p["action_base_ctrl"]
    idf = jnp.eye(num_agents, dtype=jnp.float32)[agent_id][None, :]
    idh = jax.nn.relu(ln(idf, ab["ln_g"], ab["ln_b"]) @ ab["w1"] + ab["b1"])
    id_embed = jax.nn.relu(idh @ ab["w2"] + ab["b2"])             # (1, H)

    def pack_gru(g):
        W = jnp.stack([g["w_ih"], g["w_hh"]], axis=0).astype(bf16)    # (2,H,3H)
        Bv = jnp.concatenate([g["b_ih"], g["b_hh"]], axis=0)          # (2,3H)
        L = jnp.concatenate([g["ln_g"], g["ln_b"] + id_embed], axis=0)  # (2,H)
        return W, Bv, L

    gwc, gbc, glc = pack_gru(p["ctrl_rnn"])
    gwm, gbm, glm = pack_gru(p["com_rnn"])

    hd = p["heads"]
    fn_v = jnp.concatenate([hd["fn_g"][:, :H], hd["fn_b"][:, :H],
                            hd["fn_g"][:, H:], hd["fn_b"][:, H:]], axis=0)  # (4,H)

    return (w1s, b1s, w2s, b2s, gwc, gbc, glc, gwm, gbm, glm, fn_v,
            hd["w_mean"].astype(bf16), hd["b_mean"],
            hd["w_com"].astype(bf16), hd["b_com"])


# ---------------------------------------------------------------------------
# R_Actor.forward wrapper (deterministic, use_recurrent_policy, action attention)
# ---------------------------------------------------------------------------
def r_actor_forward(params, obs, rnn_states, masks, onehot_action,
                    execution_mask, num_agents, agent_id, hidden, *,
                    tile_b=512):
    H = hidden
    B, OBS = obs.shape
    C = params["heads"]["w_mean"].shape[1]
    N = params["heads"]["w_com"].shape[1]
    lay = _layout(H, C, N)

    # `masked_actions` is computed and discarded on the action-attention branch
    # of the original module; skip the dead work entirely.
    del onehot_action, execution_mask

    packed = _pack_params(params, H, num_agents, agent_id)

    h_ctrl = rnn_states[:, :H]
    h_com = rnn_states[:, H:2 * H]

    # ---- one lane-dense batch input [obs | h_ctrl | h_com | mask | pad] ----
    xin_raw = jnp.concatenate([obs, h_ctrl, h_com, masks],
                              axis=-1).astype(jnp.float32)
    xin_w = max(128, _round_up(xin_raw.shape[1], 128))

    # On v7x pick tile_b so the grid has >=2 steps (2 TensorCores); weights are
    # resident so per-row footprint is tiny and big tiles amortize step overhead.
    tb = min(tile_b, _round_up(B, 8))
    b_pad = _round_up(B, tb)
    xin = jnp.pad(xin_raw, ((0, b_pad - B), (0, xin_w - xin_raw.shape[1])))

    def resident_spec(arr):
        nd = arr.ndim
        return pl.BlockSpec(tuple(arr.shape), lambda i: (0,) * nd)

    in_specs = ([pl.BlockSpec((tb, xin_w), lambda i: (i, 0))]
                + [resident_spec(w) for w in packed])
    out_spec = pl.BlockSpec((tb, lay["out_w"]), lambda i: (i, 0))

    out = pl.pallas_call(
        _r_actor_fused_kernel,
        out_shape=jax.ShapeDtypeStruct((b_pad, lay["out_w"]), jnp.float32),
        grid_spec=pltpu.PrefetchScalarGridSpec(
            num_scalar_prefetch=0,
            grid=(b_pad // tb,),
            in_specs=in_specs,
            out_specs=out_spec),
        compiler_params=pltpu.CompilerParams(
            dimension_semantics=("parallel",)),
    )(xin, *packed)

    obs_feat = out[:B, lay["obs"]:lay["obs"] + 2 * H]
    new_rnn_states = out[:B, lay["rnn"]:lay["rnn"] + 2 * H]
    s0 = lay["small"]
    mean = out[:B, s0:s0 + C]
    onehot = out[:B, s0 + C:s0 + C + N]
    logits_com = out[:B, s0 + C + N:s0 + C + 2 * N]
    logp_com = out[:B, s0 + C + 2 * N:s0 + C + 2 * N + 1]
    ent_com = out[:B, s0 + C + 2 * N + 1:s0 + C + 2 * N + 2]

    # Batch-constant Gaussian stats (deterministic action == mean) rebuilt here
    # instead of being stored from every kernel grid step.
    logstd = params["heads"]["logstd"]
    logp_ctrl = jnp.broadcast_to(
        jnp.sum(-logstd - 0.5 * _LOG2PI, axis=-1, keepdims=True), (B, 1))
    ent_ctrl = jnp.broadcast_to(logstd + 0.5 * (1.0 + _LOG2PI), (B, C))

    actions = jnp.concatenate([mean, onehot], axis=-1)
    logits = jnp.concatenate([mean, logits_com], axis=-1)
    action_log_probs = jnp.concatenate([logp_ctrl, logp_com], axis=-1)
    dist_entropy = jnp.concatenate([ent_ctrl, ent_com], axis=-1)

    return (actions, action_log_probs, new_rnn_states, logits, dist_entropy,
            obs_feat)


# ---------------------------------------------------------------------------
# Pure-JAX f32 reference (mirrors the original per-module math) for validation.
# ---------------------------------------------------------------------------
def _reference_forward(params, obs, rnn_states, masks, num_agents, agent_id,
                       hidden):
    H = hidden

    def ln(x, g, b):
        mu = x.mean(-1, keepdims=True)
        v = ((x - mu) ** 2).mean(-1, keepdims=True)
        return (x - mu) / jnp.sqrt(v + _EPS) * g + b

    def mlp(x, p):
        x = ln(x, p["ln_g"], p["ln_b"])
        h = jax.nn.relu(x @ p["w1"] + p["b1"])
        return jax.nn.relu(h @ p["w2"] + p["b2"])

    def gru(x, h, m, p):
        h = h * m
        gi = x @ p["w_ih"] + p["b_ih"]
        gh = h @ p["w_hh"] + p["b_hh"]
        r = jax.nn.sigmoid(gi[:, :H] + gh[:, :H])
        z = jax.nn.sigmoid(gi[:, H:2 * H] + gh[:, H:2 * H])
        n = jnp.tanh(gi[:, 2 * H:] + r * gh[:, 2 * H:])
        hn = (1.0 - z) * n + z * h
        return ln(hn, p["ln_g"], p["ln_b"]), hn

    hc, hm = rnn_states[:, :H], rnn_states[:, H:]
    cf = mlp(obs, params["base_ctrl"])
    mf = mlp(obs, params["base_com"])
    cf, hc_new = gru(cf, hc, masks, params["ctrl_rnn"])
    mf, hm_new = gru(mf, hm, masks, params["com_rnn"])
    idf = jnp.eye(num_agents, dtype=jnp.float32)[agent_id][None, :]
    ide = mlp(idf, params["action_base_ctrl"])
    afc, afm = cf + ide, mf + ide

    hd = params["heads"]
    obsf = ln(jnp.concatenate([afm, afc], -1), hd["fn_g"], hd["fn_b"])
    mean = afc @ hd["w_mean"] + hd["b_mean"]
    logstd = hd["logstd"]
    B, C = mean.shape
    logp_c = jnp.broadcast_to(
        jnp.sum(-logstd - 0.5 * _LOG2PI, -1, keepdims=True), (B, 1))
    ent_c = jnp.broadcast_to(logstd + 0.5 * (1.0 + _LOG2PI), (B, C))
    lg = afm @ hd["w_com"] + hd["b_com"]
    lse = jax.scipy.special.logsumexp(lg, axis=-1, keepdims=True)
    lp = lg - lse
    pr = jnp.exp(lp)
    idx = jnp.argmax(lg, -1)
    oh = jax.nn.one_hot(idx, lg.shape[1], dtype=jnp.float32)
    logp_m = jnp.take_along_axis(lp, idx[:, None], axis=-1)
    ent_m = -jnp.sum(pr * lp, -1, keepdims=True)

    return (jnp.concatenate([mean, oh], -1),
            jnp.concatenate([logp_c, logp_m], -1),
            jnp.concatenate([hc_new, hm_new], -1),
            jnp.concatenate([mean, lg], -1),
            jnp.concatenate([ent_c, ent_m], -1),
            obsf)


# ---------------------------------------------------------------------------
# Synthetic parameters
# ---------------------------------------------------------------------------
def _mlp_params(key, d_in, hidden):
    ks = jax.random.split(key, 6)
    return dict(
        ln_g=1.0 + 0.1 * jax.random.normal(ks[0], (1, d_in), jnp.float32),
        ln_b=0.1 * jax.random.normal(ks[1], (1, d_in), jnp.float32),
        w1=0.1 * jax.random.normal(ks[2], (d_in, hidden), jnp.float32),
        b1=0.1 * jax.random.normal(ks[3], (1, hidden), jnp.float32),
        w2=0.1 * jax.random.normal(ks[4], (hidden, hidden), jnp.float32),
        b2=0.1 * jax.random.normal(ks[5], (1, hidden), jnp.float32),
    )


def _gru_params(key, hidden):
    ks = jax.random.split(key, 6)
    return dict(
        w_ih=0.1 * jax.random.normal(ks[0], (hidden, 3 * hidden), jnp.float32),
        w_hh=0.1 * jax.random.normal(ks[1], (hidden, 3 * hidden), jnp.float32),
        b_ih=0.1 * jax.random.normal(ks[2], (1, 3 * hidden), jnp.float32),
        b_hh=0.1 * jax.random.normal(ks[3], (1, 3 * hidden), jnp.float32),
        ln_g=1.0 + 0.1 * jax.random.normal(ks[4], (1, hidden), jnp.float32),
        ln_b=0.1 * jax.random.normal(ks[5], (1, hidden), jnp.float32),
    )


def _head_params(key, hidden, c_dim, n_disc):
    ks = jax.random.split(key, 7)
    return dict(
        fn_g=1.0 + 0.1 * jax.random.normal(ks[0], (1, 2 * hidden), jnp.float32),
        fn_b=0.1 * jax.random.normal(ks[1], (1, 2 * hidden), jnp.float32),
        w_mean=0.1 * jax.random.normal(ks[2], (hidden, c_dim), jnp.float32),
        b_mean=0.1 * jax.random.normal(ks[3], (1, c_dim), jnp.float32),
        logstd=0.1 * jax.random.normal(ks[4], (1, c_dim), jnp.float32),
        w_com=0.1 * jax.random.normal(ks[5], (hidden, n_disc), jnp.float32),
        b_com=0.1 * jax.random.normal(ks[6], (1, n_disc), jnp.float32),
    )


if __name__ == "__main__":
    B = 8            # batch (threads * agents rolled flat)
    OBS = 16         # flat observation dim
    HID = 32         # actor_hidden_size
    NUM_AGENTS = 4
    AGENT_ID = 1
    C_DIM = 3        # continuous (Box) ctrl action dim
    N_DISC = 5       # discrete com action dim

    key = jax.random.PRNGKey(0)
    keys = jax.random.split(key, 10)

    params = dict(
        base_ctrl=_mlp_params(keys[0], OBS, HID),
        base_com=_mlp_params(keys[1], OBS, HID),
        ctrl_rnn=_gru_params(keys[2], HID),
        com_rnn=_gru_params(keys[3], HID),
        action_base_ctrl=_mlp_params(keys[4], NUM_AGENTS, HID),
        heads=_head_params(keys[5], HID, C_DIM, N_DISC),
    )

    obs = jax.random.normal(keys[6], (B, OBS), jnp.float32)
    rnn_states = jax.random.normal(keys[7], (B, 2 * HID), jnp.float32)
    masks = jnp.ones((B, 1), jnp.float32)
    onehot_action = jax.random.uniform(keys[8], (B, NUM_AGENTS, C_DIM + N_DISC),
                                       jnp.float32)
    execution_mask = (jax.random.uniform(keys[9], (B, NUM_AGENTS)) > 0.5
                      ).astype(jnp.float32)

    outs = r_actor_forward(params, obs, rnn_states, masks, onehot_action,
                           execution_mask, NUM_AGENTS, AGENT_ID, HID)
    outs = jax.block_until_ready(outs)

    actions, action_log_probs, new_rnn_states, logits, dist_entropy, obs_feat = outs
    assert actions.shape == (B, C_DIM + N_DISC)
    assert action_log_probs.shape == (B, 2)
    assert new_rnn_states.shape == (B, 2 * HID)
    assert logits.shape == (B, C_DIM + N_DISC)
    assert dist_entropy.shape == (B, C_DIM + 1)
    assert obs_feat.shape == (B, 2 * HID)

    # Validate against an all-f32 pure-JAX reference.  The kernel uses bf16 MXU
    # operands (f32 accumulation), so compare continuous outputs at 3e-2 and
    # check the discrete argmax with a guard for reference near-ties.
    refs = _reference_forward(params, obs, rnn_states, masks, NUM_AGENTS,
                              AGENT_ID, HID)
    tol = 3e-2
    names = ("actions", "log_probs", "rnn_states", "logits", "entropy",
             "obs_feat")
    for name, got, want in zip(names, outs, refs):
        assert got.shape == want.shape, name
        if name == "actions":
            err = float(jnp.max(jnp.abs(got[:, :C_DIM] - want[:, :C_DIM])))
        else:
            err = float(jnp.max(jnp.abs(got - want)))
        assert err < tol, (name, err)

    ref_logits_com = refs[3][:, C_DIM:]
    got_idx = jnp.argmax(actions[:, C_DIM:], axis=-1)
    ref_idx = jnp.argmax(ref_logits_com, axis=-1)
    srt = jnp.sort(ref_logits_com, axis=-1)
    gap = srt[:, -1] - srt[:, -2]
    assert bool(jnp.all((got_idx == ref_idx) | (gap < tol)))

    print("KERNEL_OK")
</pallas_src>

<mosaic_0001>
module attributes {stable_mosaic.version = 11 : i64} {
  func.func @_r_actor_fused_kernel(%arg0: i32, %arg1: memref<8x128xf32, #tpu.memory_space<vmem>>, %arg2: memref<2x16x32xbf16, #tpu.memory_space<vmem>>, %arg3: memref<2x32xf32, #tpu.memory_space<vmem>>, %arg4: memref<2x32x32xbf16, #tpu.memory_space<vmem>>, %arg5: memref<2x32xf32, #tpu.memory_space<vmem>>, %arg6: memref<2x32x96xbf16, #tpu.memory_space<vmem>>, %arg7: memref<2x96xf32, #tpu.memory_space<vmem>>, %arg8: memref<2x32xf32, #tpu.memory_space<vmem>>, %arg9: memref<2x32x96xbf16, #tpu.memory_space<vmem>>, %arg10: memref<2x96xf32, #tpu.memory_space<vmem>>, %arg11: memref<2x32xf32, #tpu.memory_space<vmem>>, %arg12: memref<4x32xf32, #tpu.memory_space<vmem>>, %arg13: memref<32x3xbf16, #tpu.memory_space<vmem>>, %arg14: memref<1x3xf32, #tpu.memory_space<vmem>>, %arg15: memref<32x5xbf16, #tpu.memory_space<vmem>>, %arg16: memref<1x5xf32, #tpu.memory_space<vmem>>, %arg17: memref<8x256xf32, #tpu.memory_space<vmem>>) attributes {dimension_semantics = [#tpu.dimension_semantics<parallel>], iteration_bounds = array<i64: 1>, scalar_prefetch = 0 : i64, scratch_operands = 0 : i64, tpu.core_type = #tpu.core_type<tc>, window_params = [{transform_indices = @transform_0, window_bounds = array<i64: 8, 128>}, {pipeline_mode = #tpu.pipeline_mode<synchronous>, transform_indices = @transform_1, window_bounds = array<i64: 2, 16, 32>}, {pipeline_mode = #tpu.pipeline_mode<synchronous>, transform_indices = @transform_2, window_bounds = array<i64: 2, 32>}, {pipeline_mode = #tpu.pipeline_mode<synchronous>, transform_indices = @transform_3, window_bounds = array<i64: 2, 32, 32>}, {pipeline_mode = #tpu.pipeline_mode<synchronous>, transform_indices = @transform_4, window_bounds = array<i64: 2, 32>}, {pipeline_mode = #tpu.pipeline_mode<synchronous>, transform_indices = @transform_5, window_bounds = array<i64: 2, 32, 96>}, {pipeline_mode = #tpu.pipeline_mode<synchronous>, transform_indices = @transform_6, window_bounds = array<i64: 2, 96>}, {pipeline_mode = #tpu.pipeline_mode<synchronous>, transform_indices = @transform_7, window_bounds = array<i64: 2, 32>}, {pipeline_mode = #tpu.pipeline_mode<synchronous>, transform_indices = @transform_8, window_bounds = array<i64: 2, 32, 96>}, {pipeline_mode = #tpu.pipeline_mode<synchronous>, transform_indices = @transform_9, window_bounds = array<i64: 2, 96>}, {pipeline_mode = #tpu.pipeline_mode<synchronous>, transform_indices = @transform_10, window_bounds = array<i64: 2, 32>}, {pipeline_mode = #tpu.pipeline_mode<synchronous>, transform_indices = @transform_11, window_bounds = array<i64: 4, 32>}, {pipeline_mode = #tpu.pipeline_mode<synchronous>, transform_indices = @transform_12, window_bounds = array<i64: 32, 3>}, {pipeline_mode = #tpu.pipeline_mode<synchronous>, transform_indices = @transform_13, window_bounds = array<i64: 1, 3>}, {pipeline_mode = #tpu.pipeline_mode<synchronous>, transform_indices = @transform_14, window_bounds = array<i64: 32, 5>}, {pipeline_mode = #tpu.pipeline_mode<synchronous>, transform_indices = @transform_15, window_bounds = array<i64: 1, 5>}, {transform_indices = @transform_16, window_bounds = array<i64: 8, 256>}]} {
    %c0 = arith.constant 0 : index
    %c0_0 = arith.constant 0 : index
    %0 = vector.load %arg1[%c0, %c0_0] : memref<8x128xf32, #tpu.memory_space<vmem>>, vector<8x128xf32>
    %1 = vector.extract_strided_slice %0 {offsets = [0, 0], sizes = [8, 16], strides = [1, 1]} : vector<8x128xf32> to vector<8x16xf32>
    %2 = vector.extract_strided_slice %0 {offsets = [0, 16], sizes = [8, 32], strides = [1, 1]} : vector<8x128xf32> to vector<8x32xf32>
    %3 = vector.extract_strided_slice %0 {offsets = [0, 48], sizes = [8, 32], strides = [1, 1]} : vector<8x128xf32> to vector<8x32xf32>
    %4 = vector.extract_strided_slice %0 {offsets = [0, 80], sizes = [8, 1], strides = [1, 1]} : vector<8x128xf32> to vector<8x1xf32>
    %cst = arith.constant dense<0.000000e+00> : vector<8xf32>
    %5 = vector.multi_reduction <add>, %1, %cst [1] : vector<8x16xf32> to vector<8xf32>
    %6 = vector.shape_cast %5 : vector<8xf32> to vector<8x1xf32>
    %cst_1 = arith.constant 1.600000e+01 : f32
    %7 = vector.broadcast %cst_1 : f32 to vector<8x1xf32>
    %8 = arith.divf %6, %7 : vector<8x1xf32>
    %9 = vector.broadcast %8 : vector<8x1xf32> to vector<8x16xf32>
    %10 = arith.subf %1, %9 : vector<8x16xf32>
    %11 = arith.mulf %10, %10 : vector<8x16xf32>
    %cst_2 = arith.constant dense<0.000000e+00> : vector<8xf32>
    %12 = vector.multi_reduction <add>, %11, %cst_2 [1] : vector<8x16xf32> to vector<8xf32>
    %13 = vector.shape_cast %12 : vector<8xf32> to vector<8x1xf32>
    %cst_3 = arith.constant 1.600000e+01 : f32
    %14 = vector.broadcast %cst_3 : f32 to vector<8x1xf32>
    %15 = arith.divf %13, %14 : vector<8x1xf32>
    %cst_4 = arith.constant 9.99999974E-6 : f32
    %16 = vector.broadcast %cst_4 : f32 to vector<8x1xf32>
    %17 = arith.addf %15, %16 : vector<8x1xf32>
    %18 = math.rsqrt %17 : vector<8x1xf32>
    %19 = vector.broadcast %18 : vector<8x1xf32> to vector<8x16xf32>
    %20 = arith.mulf %10, %19 : vector<8x16xf32>
    %c0_5 = arith.constant 0 : index
    %c0_6 = arith.constant 0 : index
    %c0_7 = arith.constant 0 : index
    %21 = vector.load %arg2[%c0_5, %c0_6, %c0_7] : memref<2x16x32xbf16, #tpu.memory_space<vmem>>, vector<1x16x32xbf16>
    %22 = vector.shape_cast %21 : vector<1x16x32xbf16> to vector<16x32xbf16>
    %23 = arith.truncf %20 : vector<8x16xf32> to vector<8x16xbf16>
    %cst_8 = arith.constant dense<0.000000e+00> : vector<8x32xf32>
    %24 = tpu.matmul %23, %22, %cst_8 {dimension_numbers = #tpu.dot_dimension_numbers<[1], [0], [0], [1], [0, 0, 1, 1], [], []>} : vector<8x16xbf16>, vector<16x32xbf16>, vector<8x32xf32> -> vector<8x32xf32>
    %c0_9 = arith.constant 0 : index
    %c0_10 = arith.constant 0 : index
    %25 = vector.load %arg3[%c0_9, %c0_10] : memref<2x32xf32, #tpu.memory_space<vmem>>, vector<1x32xf32>
    %26 = vector.broadcast %25 : vector<1x32xf32> to vector<8x32xf32>
    %27 = arith.addf %24, %26 : vector<8x32xf32>
    %cst_11 = arith.constant 0.000000e+00 : f32
    %28 = vector.broadcast %cst_11 : f32 to vector<8x32xf32>
    %29 = arith.maximumf %27, %28 : vector<8x32xf32>
    %c0_12 = arith.constant 0 : index
    %c0_13 = arith.constant 0 : index
    %c0_14 = arith.constant 0 : index
    %30 = vector.load %arg4[%c0_12, %c0_13, %c0_14] : memref<2x32x32xbf16, #tpu.memory_space<vmem>>, vector<1x32x32xbf16>
    %31 = vector.shape_cast %30 : vector<1x32x32xbf16> to vector<32x32xbf16>
    %32 = arith.truncf %29 : vector<8x32xf32> to vector<8x32xbf16>
    %cst_15 = arith.constant dense<0.000000e+00> : vector<8x32xf32>
    %33 = tpu.matmul %32, %31, %cst_15 {dimension_numbers = #tpu.dot_dimension_numbers<[1], [0], [0], [1], [0, 0, 1, 1], [], []>} : vector<8x32xbf16>, vector<32x32xbf16>, vector<8x32xf32> -> vector<8x32xf32>
    %c0_16 = arith.constant 0 : index
    %c0_17 = arith.constant 0 : index
    %34 = vector.load %arg5[%c0_16, %c0_17] : memref<2x32xf32, #tpu.memory_space<vmem>>, vector<1x32xf32>
    %35 = vector.broadcast %34 : vector<1x32xf32> to vector<8x32xf32>
    %36 = arith.addf %33, %35 : vector<8x32xf32>
    %cst_18 = arith.constant 0.000000e+00 : f32
    %37 = vector.broadcast %cst_18 : f32 to vector<8x32xf32>
    %38 = arith.maximumf %36, %37 : vector<8x32xf32>
    %c1 = arith.constant 1 : index
    %c0_19 = arith.constant 0 : index
    %c0_20 = arith.constant 0 : index
    %39 = vector.load %arg2[%c1, %c0_19, %c0_20] : memref<2x16x32xbf16, #tpu.memory_space<vmem>>, vector<1x16x32xbf16>
    %40 = vector.shape_cast %39 : vector<1x16x32xbf16> to vector<16x32xbf16>
    %41 = arith.truncf %20 : vector<8x16xf32> to vector<8x16xbf16>
    %cst_21 = arith.constant dense<0.000000e+00> : vector<8x32xf32>
    %42 = tpu.matmul %41, %40, %cst_21 {dimension_numbers = #tpu.dot_dimension_numbers<[1], [0], [0], [1], [0, 0, 1, 1], [], []>} : vector<8x16xbf16>, vector<16x32xbf16>, vector<8x32xf32> -> vector<8x32xf32>
    %c1_22 = arith.constant 1 : index
    %c0_23 = arith.constant 0 : index
    %43 = vector.load %arg3[%c1_22, %c0_23] : memref<2x32xf32, #tpu.memory_space<vmem>>, vector<1x32xf32>
    %44 = vector.broadcast %43 : vector<1x32xf32> to vector<8x32xf32>
    %45 = arith.addf %42, %44 : vector<8x32xf32>
    %cst_24 = arith.constant 0.000000e+00 : f32
    %46 = vector.broadcast %cst_24 : f32 to vector<8x32xf32>
    %47 = arith.maximumf %45, %46 : vector<8x32xf32>
    %c1_25 = arith.constant 1 : index
    %c0_26 = arith.constant 0 : index
    %c0_27 = arith.constant 0 : index
    %48 = vector.load %arg4[%c1_25, %c0_26, %c0_27] : memref<2x32x32xbf16, #tpu.memory_space<vmem>>, vector<1x32x32xbf16>
    %49 = vector.shape_cast %48 : vector<1x32x32xbf16> to vector<32x32xbf16>
    %50 = arith.truncf %47 : vector<8x32xf32> to vector<8x32xbf16>
    %cst_28 = arith.constant dense<0.000000e+00> : vector<8x32xf32>
    %51 = tpu.matmul %50, %49, %cst_28 {dimension_numbers = #tpu.dot_dimension_numbers<[1], [0], [0], [1], [0, 0, 1, 1], [], []>} : vector<8x32xbf16>, vector<32x32xbf16>, vector<8x32xf32> -> vector<8x32xf32>
    %c1_29 = arith.constant 1 : index
    %c0_30 = arith.constant 0 : index
    %52 = vector.load %arg5[%c1_29, %c0_30] : memref<2x32xf32, #tpu.memory_space<vmem>>, vector<1x32xf32>
    %53 = vector.broadcast %52 : vector<1x32xf32> to vector<8x32xf32>
    %54 = arith.addf %51, %53 : vector<8x32xf32>
    %cst_31 = arith.constant 0.000000e+00 : f32
    %55 = vector.broadcast %cst_31 : f32 to vector<8x32xf32>
    %56 = arith.maximumf %54, %55 : vector<8x32xf32>
    %57 = vector.broadcast %4 : vector<8x1xf32> to vector<8x32xf32>
    %58 = arith.mulf %2, %57 : vector<8x32xf32>
    %c0_32 = arith.constant 0 : index
    %c0_33 = arith.constant 0 : index
    %c0_34 = arith.constant 0 : index
    %59 = vector.load %arg6[%c0_32, %c0_33, %c0_34] : memref<2x32x96xbf16, #tpu.memory_space<vmem>>, vector<1x32x96xbf16>
    %60 = vector.shape_cast %59 : vector<1x32x96xbf16> to vector<32x96xbf16>
    %61 = arith.truncf %38 : vector<8x32xf32> to vector<8x32xbf16>
    %cst_35 = arith.constant dense<0.000000e+00> : vector<8x96xf32>
    %62 = tpu.matmul %61, %60, %cst_35 {dimension_numbers = #tpu.dot_dimension_numbers<[1], [0], [0], [1], [0, 0, 1, 1], [], []>} : vector<8x32xbf16>, vector<32x96xbf16>, vector<8x96xf32> -> vector<8x96xf32>
    %c0_36 = arith.constant 0 : index
    %c0_37 = arith.constant 0 : index
    %63 = vector.load %arg7[%c0_36, %c0_37] : memref<2x96xf32, #tpu.memory_space<vmem>>, vector<1x96xf32>
    %64 = vector.broadcast %63 : vector<1x96xf32> to vector<8x96xf32>
    %65 = arith.addf %62, %64 : vector<8x96xf32>
    %c1_38 = arith.constant 1 : index
    %c0_39 = arith.constant 0 : index
    %c0_40 = arith.constant 0 : index
    %66 = vector.load %arg6[%c1_38, %c0_39, %c0_40] : memref<2x32x96xbf16, #tpu.memory_space<vmem>>, vector<1x32x96xbf16>
    %67 = vector.shape_cast %66 : vector<1x32x96xbf16> to vector<32x96xbf16>
    %68 = arith.truncf %58 : vector<8x32xf32> to vector<8x32xbf16>
    %cst_41 = arith.constant dense<0.000000e+00> : vector<8x96xf32>
    %69 = tpu.matmul %68, %67, %cst_41 {dimension_numbers = #tpu.dot_dimension_numbers<[1], [0], [0], [1], [0, 0, 1, 1], [], []>} : vector<8x32xbf16>, vector<32x96xbf16>, vector<8x96xf32> -> vector<8x96xf32>
    %c1_42 = arith.constant 1 : index
    %c0_43 = arith.constant 0 : index
    %70 = vector.load %arg7[%c1_42, %c0_43] : memref<2x96xf32, #tpu.memory_space<vmem>>, vector<1x96xf32>
    %71 = vector.broadcast %70 : vector<1x96xf32> to vector<8x96xf32>
    %72 = arith.addf %69, %71 : vector<8x96xf32>
    %73 = vector.extract_strided_slice %65 {offsets = [0, 0], sizes = [8, 32], strides = [1, 1]} : vector<8x96xf32> to vector<8x32xf32>
    %74 = vector.extract_strided_slice %72 {offsets = [0, 0], sizes = [8, 32], strides = [1, 1]} : vector<8x96xf32> to vector<8x32xf32>
    %75 = arith.addf %73, %74 : vector<8x32xf32>
    %76 = arith.negf %75 : vector<8x32xf32>
    %77 = math.exp %76 : vector<8x32xf32>
    %cst_44 = arith.constant 1.000000e+00 : f32
    %78 = vector.broadcast %cst_44 : f32 to vector<8x32xf32>
    %79 = arith.addf %78, %77 : vector<8x32xf32>
    %80 = arith.divf %78, %79 : vector<8x32xf32>
    %81 = vector.extract_strided_slice %65 {offsets = [0, 32], sizes = [8, 32], strides = [1, 1]} : vector<8x96xf32> to vector<8x32xf32>
    %82 = vector.extract_strided_slice %72 {offsets = [0, 32], sizes = [8, 32], strides = [1, 1]} : vector<8x96xf32> to vector<8x32xf32>
    %83 = arith.addf %81, %82 : vector<8x32xf32>
    %84 = arith.negf %83 : vector<8x32xf32>
    %85 = math.exp %84 : vector<8x32xf32>
    %cst_45 = arith.constant 1.000000e+00 : f32
    %86 = vector.broadcast %cst_45 : f32 to vector<8x32xf32>
    %87 = arith.addf %86, %85 : vector<8x32xf32>
    %88 = arith.divf %86, %87 : vector<8x32xf32>
    %89 = vector.extract_strided_slice %65 {offsets = [0, 64], sizes = [8, 32], strides = [1, 1]} : vector<8x96xf32> to vector<8x32xf32>
    %90 = vector.extract_strided_slice %72 {offsets = [0, 64], sizes = [8, 32], strides = [1, 1]} : vector<8x96xf32> to vector<8x32xf32>
    %91 = arith.mulf %80, %90 : vector<8x32xf32>
    %92 = arith.addf %89, %91 : vector<8x32xf32>
    %93 = math.tanh %92 : vector<8x32xf32>
    %cst_46 = arith.constant 1.000000e+00 : f32
    %94 = vector.broadcast %cst_46 : f32 to vector<8x32xf32>
    %95 = arith.subf %94, %88 : vector<8x32xf32>
    %96 = arith.mulf %95, %93 : vector<8x32xf32>
    %97 = arith.mulf %88, %58 : vector<8x32xf32>
    %98 = arith.addf %96, %97 : vector<8x32xf32>
    %cst_47 = arith.constant dense<0.000000e+00> : vector<8xf32>
    %99 = vector.multi_reduction <add>, %98, %cst_47 [1] : vector<8x32xf32> to vector<8xf32>
    %100 = vector.shape_cast %99 : vector<8xf32> to vector<8x1xf32>
    %cst_48 = arith.constant 3.200000e+01 : f32
    %101 = vector.broadcast %cst_48 : f32 to vector<8x1xf32>
    %102 = arith.divf %100, %101 : vector<8x1xf32>
    %103 = vector.broadcast %102 : vector<8x1xf32> to vector<8x32xf32>
    %104 = arith.subf %98, %103 : vector<8x32xf32>
    %105 = arith.mulf %104, %104 : vector<8x32xf32>
    %cst_49 = arith.constant dense<0.000000e+00> : vector<8xf32>
    %106 = vector.multi_reduction <add>, %105, %cst_49 [1] : vector<8x32xf32> to vector<8xf32>
    %107 = vector.shape_cast %106 : vector<8xf32> to vector<8x1xf32>
    %cst_50 = arith.constant 3.200000e+01 : f32
    %108 = vector.broadcast %cst_50 : f32 to vector<8x1xf32>
    %109 = arith.divf %107, %108 : vector<8x1xf32>
    %cst_51 = arith.constant 9.99999974E-6 : f32
    %110 = vector.broadcast %cst_51 : f32 to vector<8x1xf32>
    %111 = arith.addf %109, %110 : vector<8x1xf32>
    %112 = math.rsqrt %111 : vector<8x1xf32>
    %113 = vector.broadcast %112 : vector<8x1xf32> to vector<8x32xf32>
    %114 = arith.mulf %104, %113 : vector<8x32xf32>
    %c0_52 = arith.constant 0 : index
    %c0_53 = arith.constant 0 : index
    %115 = vector.load %arg8[%c0_52, %c0_53] : memref<2x32xf32, #tpu.memory_space<vmem>>, vector<1x32xf32>
    %116 = vector.broadcast %115 : vector<1x32xf32> to vector<8x32xf32>
    %117 = arith.mulf %114, %116 : vector<8x32xf32>
    %c1_54 = arith.constant 1 : index
    %c0_55 = arith.constant 0 : index
    %118 = vector.load %arg8[%c1_54, %c0_55] : memref<2x32xf32, #tpu.memory_space<vmem>>, vector<1x32xf32>
    %119 = vector.broadcast %118 : vector<1x32xf32> to vector<8x32xf32>
    %120 = arith.addf %117, %119 : vector<8x32xf32>
    %121 = vector.broadcast %4 : vector<8x1xf32> to vector<8x32xf32>
    %122 = arith.mulf %3, %121 : vector<8x32xf32>
    %c0_56 = arith.constant 0 : index
    %c0_57 = arith.constant 0 : index
    %c0_58 = arith.constant 0 : index
    %123 = vector.load %arg9[%c0_56, %c0_57, %c0_58] : memref<2x32x96xbf16, #tpu.memory_space<vmem>>, vector<1x32x96xbf16>
    %124 = vector.shape_cast %123 : vector<1x32x96xbf16> to vector<32x96xbf16>
    %125 = arith.truncf %56 : vector<8x32xf32> to vector<8x32xbf16>
    %cst_59 = arith.constant dense<0.000000e+00> : vector<8x96xf32>
    %126 = tpu.matmul %125, %124, %cst_59 {dimension_numbers = #tpu.dot_dimension_numbers<[1], [0], [0], [1], [0, 0, 1, 1], [], []>} : vector<8x32xbf16>, vector<32x96xbf16>, vector<8x96xf32> -> vector<8x96xf32>
    %c0_60 = arith.constant 0 : index
    %c0_61 = arith.constant 0 : index
    %127 = vector.load %arg10[%c0_60, %c0_61] : memref<2x96xf32, #tpu.memory_space<vmem>>, vector<1x96xf32>
    %128 = vector.broadcast %127 : vector<1x96xf32> to vector<8x96xf32>
    %129 = arith.addf %126, %128 : vector<8x96xf32>
    %c1_62 = arith.constant 1 : index
    %c0_63 = arith.constant 0 : index
    %c0_64 = arith.constant 0 : index
    %130 = vector.load %arg9[%c1_62, %c0_63, %c0_64] : memref<2x32x96xbf16, #tpu.memory_space<vmem>>, vector<1x32x96xbf16>
    %131 = vector.shape_cast %130 : vector<1x32x96xbf16> to vector<32x96xbf16>
    %132 = arith.truncf %122 : vector<8x32xf32> to vector<8x32xbf16>
    %cst_65 = arith.constant dense<0.000000e+00> : vector<8x96xf32>
    %133 = tpu.matmul %132, %131, %cst_65 {dimension_numbers = #tpu.dot_dimension_numbers<[1], [0], [0], [1], [0, 0, 1, 1], [], []>} : vector<8x32xbf16>, vector<32x96xbf16>, vector<8x96xf32> -> vector<8x96xf32>
    %c1_66 = arith.constant 1 : index
    %c0_67 = arith.constant 0 : index
    %134 = vector.load %arg10[%c1_66, %c0_67] : memref<2x96xf32, #tpu.memory_space<vmem>>, vector<1x96xf32>
    %135 = vector.broadcast %134 : vector<1x96xf32> to vector<8x96xf32>
    %136 = arith.addf %133, %135 : vector<8x96xf32>
    %137 = vector.extract_strided_slice %129 {offsets = [0, 0], sizes = [8, 32], strides = [1, 1]} : vector<8x96xf32> to vector<8x32xf32>
    %138 = vector.extract_strided_slice %136 {offsets = [0, 0], sizes = [8, 32], strides = [1, 1]} : vector<8x96xf32> to vector<8x32xf32>
    %139 = arith.addf %137, %138 : vector<8x32xf32>
    %140 = arith.negf %139 : vector<8x32xf32>
    %141 = math.exp %140 : vector<8x32xf32>
    %cst_68 = arith.constant 1.000000e+00 : f32
    %142 = vector.broadcast %cst_68 : f32 to vector<8x32xf32>
    %143 = arith.addf %142, %141 : vector<8x32xf32>
    %144 = arith.divf %142, %143 : vector<8x32xf32>
    %145 = vector.extract_strided_slice %129 {offsets = [0, 32], sizes = [8, 32], strides = [1, 1]} : vector<8x96xf32> to vector<8x32xf32>
    %146 = vector.extract_strided_slice %136 {offsets = [0, 32], sizes = [8, 32], strides = [1, 1]} : vector<8x96xf32> to vector<8x32xf32>
    %147 = arith.addf %145, %146 : vector<8x32xf32>
    %148 = arith.negf %147 : vector<8x32xf32>
    %149 = math.exp %148 : vector<8x32xf32>
    %cst_69 = arith.constant 1.000000e+00 : f32
    %150 = vector.broadcast %cst_69 : f32 to vector<8x32xf32>
    %151 = arith.addf %150, %149 : vector<8x32xf32>
    %152 = arith.divf %150, %151 : vector<8x32xf32>
    %153 = vector.extract_strided_slice %129 {offsets = [0, 64], sizes = [8, 32], strides = [1, 1]} : vector<8x96xf32> to vector<8x32xf32>
    %154 = vector.extract_strided_slice %136 {offsets = [0, 64], sizes = [8, 32], strides = [1, 1]} : vector<8x96xf32> to vector<8x32xf32>
    %155 = arith.mulf %144, %154 : vector<8x32xf32>
    %156 = arith.addf %153, %155 : vector<8x32xf32>
    %157 = math.tanh %156 : vector<8x32xf32>
    %cst_70 = arith.constant 1.000000e+00 : f32
    %158 = vector.broadcast %cst_70 : f32 to vector<8x32xf32>
    %159 = arith.subf %158, %152 : vector<8x32xf32>
    %160 = arith.mulf %159, %157 : vector<8x32xf32>
    %161 = arith.mulf %152, %122 : vector<8x32xf32>
    %162 = arith.addf %160, %161 : vector<8x32xf32>
    %cst_71 = arith.constant dense<0.000000e+00> : vector<8xf32>
    %163 = vector.multi_reduction <add>, %162, %cst_71 [1] : vector<8x32xf32> to vector<8xf32>
    %164 = vector.shape_cast %163 : vector<8xf32> to vector<8x1xf32>
    %cst_72 = arith.constant 3.200000e+01 : f32
    %165 = vector.broadcast %cst_72 : f32 to vector<8x1xf32>
    %166 = arith.divf %164, %165 : vector<8x1xf32>
    %167 = vector.broadcast %166 : vector<8x1xf32> to vector<8x32xf32>
    %168 = arith.subf %162, %167 : vector<8x32xf32>
    %169 = arith.mulf %168, %168 : vector<8x32xf32>
    %cst_73 = arith.constant dense<0.000000e+00> : vector<8xf32>
    %170 = vector.multi_reduction <add>, %169, %cst_73 [1] : vector<8x32xf32> to vector<8xf32>
    %171 = vector.shape_cast %170 : vector<8xf32> to vector<8x1xf32>
    %cst_74 = arith.constant 3.200000e+01 : f32
    %172 = vector.broadcast %cst_74 : f32 to vector<8x1xf32>
    %173 = arith.divf %171, %172 : vector<8x1xf32>
    %cst_75 = arith.constant 9.99999974E-6 : f32
    %174 = vector.broadcast %cst_75 : f32 to vector<8x1xf32>
    %175 = arith.addf %173, %174 : vector<8x1xf32>
    %176 = math.rsqrt %175 : vector<8x1xf32>
    %177 = vector.broadcast %176 : vector<8x1xf32> to vector<8x32xf32>
    %178 = arith.mulf %168, %177 : vector<8x32xf32>
    %c0_76 = arith.constant 0 : index
    %c0_77 = arith.constant 0 : index
    %179 = vector.load %arg11[%c0_76, %c0_77] : memref<2x32xf32, #tpu.memory_space<vmem>>, vector<1x32xf32>
    %180 = vector.broadcast %179 : vector<1x32xf32> to vector<8x32xf32>
    %181 = arith.mulf %178, %180 : vector<8x32xf32>
    %c1_78 = arith.constant 1 : index
    %c0_79 = arith.constant 0 : index
    %182 = vector.load %arg11[%c1_78, %c0_79] : memref<2x32xf32, #tpu.memory_space<vmem>>, vector<1x32xf32>
    %183 = vector.broadcast %182 : vector<1x32xf32> to vector<8x32xf32>
    %184 = arith.addf %181, %183 : vector<8x32xf32>
    %cst_80 = arith.constant dense<0.000000e+00> : vector<8xf32>
    %185 = vector.multi_reduction <add>, %184, %cst_80 [1] : vector<8x32xf32> to vector<8xf32>
    %186 = vector.shape_cast %185 : vector<8xf32> to vector<8x1xf32>
    %cst_81 = arith.constant dense<0.000000e+00> : vector<8xf32>
    %187 = vector.multi_reduction <add>, %120, %cst_81 [1] : vector<8x32xf32> to vector<8xf32>
    %188 = vector.shape_cast %187 : vector<8xf32> to vector<8x1xf32>
    %189 = arith.addf %186, %188 : vector<8x1xf32>
    %cst_82 = arith.constant 1.562500e-02 : f32
    %190 = vector.broadcast %cst_82 : f32 to vector<8x1xf32>
    %191 = arith.mulf %189, %190 : vector<8x1xf32>
    %192 = vector.broadcast %191 : vector<8x1xf32> to vector<8x32xf32>
    %193 = arith.subf %184, %192 : vector<8x32xf32>
    %194 = vector.broadcast %191 : vector<8x1xf32> to vector<8x32xf32>
    %195 = arith.subf %120, %194 : vector<8x32xf32>
    %196 = arith.mulf %193, %193 : vector<8x32xf32>
    %cst_83 = arith.constant dense<0.000000e+00> : vector<8xf32>
    %197 = vector.multi_reduction <add>, %196, %cst_83 [1] : vector<8x32xf32> to vector<8xf32>
    %198 = vector.shape_cast %197 : vector<8xf32> to vector<8x1xf32>
    %199 = arith.mulf %195, %195 : vector<8x32xf32>
    %cst_84 = arith.constant dense<0.000000e+00> : vector<8xf32>
    %200 = vector.multi_reduction <add>, %199, %cst_84 [1] : vector<8x32xf32> to vector<8xf32>
    %201 = vector.shape_cast %200 : vector<8xf32> to vector<8x1xf32>
    %202 = arith.addf %198, %201 : vector<8x1xf32>
    %cst_85 = arith.constant 1.562500e-02 : f32
    %203 = vector.broadcast %cst_85 : f32 to vector<8x1xf32>
    %204 = arith.mulf %202, %203 : vector<8x1xf32>
    %cst_86 = arith.constant 9.99999974E-6 : f32
    %205 = vector.broadcast %cst_86 : f32 to vector<8x1xf32>
    %206 = arith.addf %204, %205 : vector<8x1xf32>
    %207 = math.rsqrt %206 : vector<8x1xf32>
    %208 = vector.broadcast %207 : vector<8x1xf32> to vector<8x32xf32>
    %209 = arith.mulf %193, %208 : vector<8x32xf32>
    %c0_87 = arith.constant 0 : index
    %c0_88 = arith.constant 0 : index
    %210 = vector.load %arg12[%c0_87, %c0_88] : memref<4x32xf32, #tpu.memory_space<vmem>>, vector<1x32xf32>
    %211 = vector.broadcast %210 : vector<1x32xf32> to vector<8x32xf32>
    %212 = arith.mulf %209, %211 : vector<8x32xf32>
    %c1_89 = arith.constant 1 : index
    %c0_90 = arith.constant 0 : index
    %213 = vector.load %arg12[%c1_89, %c0_90] : memref<4x32xf32, #tpu.memory_space<vmem>>, vector<1x32xf32>
    %214 = vector.broadcast %213 : vector<1x32xf32> to vector<8x32xf32>
    %215 = arith.addf %212, %214 : vector<8x32xf32>
    %216 = vector.broadcast %207 : vector<8x1xf32> to vector<8x32xf32>
    %217 = arith.mulf %195, %216 : vector<8x32xf32>
    %c2 = arith.constant 2 : index
    %c0_91 = arith.constant 0 : index
    %218 = vector.load %arg12[%c2, %c0_91] : memref<4x32xf32, #tpu.memory_space<vmem>>, vector<1x32xf32>
    %219 = vector.broadcast %218 : vector<1x32xf32> to vector<8x32xf32>
    %220 = arith.mulf %217, %219 : vector<8x32xf32>
    %c3 = arith.constant 3 : index
    %c0_92 = arith.constant 0 : index
    %221 = vector.load %arg12[%c3, %c0_92] : memref<4x32xf32, #tpu.memory_space<vmem>>, vector<1x32xf32>
    %222 = vector.broadcast %221 : vector<1x32xf32> to vector<8x32xf32>
    %223 = arith.addf %220, %222 : vector<8x32xf32>
    %c0_93 = arith.constant 0 : index
    %c0_94 = arith.constant 0 : index
    %224 = vector.load %arg13[%c0_93, %c0_94] : memref<32x3xbf16, #tpu.memory_space<vmem>>, vector<32x3xbf16>
    %225 = arith.truncf %120 : vector<8x32xf32> to vector<8x32xbf16>
    %cst_95 = arith.constant dense<0.000000e+00> : vector<8x3xf32>
    %226 = tpu.matmul %225, %224, %cst_95 {dimension_numbers = #tpu.dot_dimension_numbers<[1], [0], [0], [1], [0, 0, 1, 1], [], []>} : vector<8x32xbf16>, vector<32x3xbf16>, vector<8x3xf32> -> vector<8x3xf32>
    %c0_96 = arith.constant 0 : index
    %c0_97 = arith.constant 0 : index
    %227 = vector.load %arg14[%c0_96, %c0_97] : memref<1x3xf32, #tpu.memory_space<vmem>>, vector<1x3xf32>
    %228 = vector.broadcast %227 : vector<1x3xf32> to vector<8x3xf32>
    %229 = arith.addf %226, %228 : vector<8x3xf32>
    %c0_98 = arith.constant 0 : index
    %c0_99 = arith.constant 0 : index
    %230 = vector.load %arg15[%c0_98, %c0_99] : memref<32x5xbf16, #tpu.memory_space<vmem>>, vector<32x5xbf16>
    %231 = arith.truncf %184 : vector<8x32xf32> to vector<8x32xbf16>
    %cst_100 = arith.constant dense<0.000000e+00> : vector<8x5xf32>
    %232 = tpu.matmul %231, %230, %cst_100 {dimension_numbers = #tpu.dot_dimension_numbers<[1], [0], [0], [1], [0, 0, 1, 1], [], []>} : vector<8x32xbf16>, vector<32x5xbf16>, vector<8x5xf32> -> vector<8x5xf32>
    %c0_101 = arith.constant 0 : index
    %c0_102 = arith.constant 0 : index
    %233 = vector.load %arg16[%c0_101, %c0_102] : memref<1x5xf32, #tpu.memory_space<vmem>>, vector<1x5xf32>
    %234 = vector.broadcast %233 : vector<1x5xf32> to vector<8x5xf32>
    %235 = arith.addf %232, %234 : vector<8x5xf32>
    %cst_103 = arith.constant dense<0xFF800000> : vector<8xf32>
    %236 = vector.multi_reduction <maximumf>, %235, %cst_103 [1] : vector<8x5xf32> to vector<8xf32>
    %237 = vector.shape_cast %236 : vector<8xf32> to vector<8x1xf32>
    %238 = vector.broadcast %237 : vector<8x1xf32> to vector<8x5xf32>
    %239 = arith.subf %235, %238 : vector<8x5xf32>
    %240 = math.exp %239 : vector<8x5xf32>
    %cst_104 = arith.constant dense<0.000000e+00> : vector<8xf32>
    %241 = vector.multi_reduction <add>, %240, %cst_104 [1] : vector<8x5xf32> to vector<8xf32>
    %242 = vector.shape_cast %241 : vector<8xf32> to vector<8x1xf32>
    %243 = math.log %242 : vector<8x1xf32>
    %244 = arith.addf %243, %237 : vector<8x1xf32>
    %245 = vector.broadcast %244 : vector<8x1xf32> to vector<8x5xf32>
    %246 = arith.subf %235, %245 : vector<8x5xf32>
    %247 = math.exp %246 : vector<8x5xf32>
    %248 = tpu.iota {dimensions = array<i32: 1>} : vector<8x5xi32>
    %249 = vector.broadcast %237 : vector<8x1xf32> to vector<8x5xf32>
    %250 = arith.cmpf oge, %235, %249 : vector<8x5xf32>
    %c5_i32 = arith.constant 5 : i32
    %251 = vector.broadcast %c5_i32 : i32 to vector<8x5xi32>
    %252 = arith.select %250, %248, %251 : vector<8x5xi1>, vector<8x5xi32>
    %cst_105 = arith.constant dense<2147483647> : vector<8xi32>
    %253 = vector.multi_reduction <minsi>, %252, %cst_105 [1] : vector<8x5xi32> to vector<8xi32>
    %254 = vector.shape_cast %253 : vector<8xi32> to vector<8x1xi32>
    %255 = vector.broadcast %254 : vector<8x1xi32> to vector<8x5xi32>
    %256 = arith.cmpi eq, %248, %255 : vector<8x5xi32>
    %257 = arith.extui %256 : vector<8x5xi1> to vector<8x5xi32>
    %258 = arith.sitofp %257 : vector<8x5xi32> to vector<8x5xf32>
    %259 = arith.subf %237, %244 : vector<8x1xf32>
    %260 = arith.mulf %247, %246 : vector<8x5xf32>
    %cst_106 = arith.constant dense<0.000000e+00> : vector<8xf32>
    %261 = vector.multi_reduction <add>, %260, %cst_106 [1] : vector<8x5xf32> to vector<8xf32>
    %262 = vector.shape_cast %261 : vector<8xf32> to vector<8x1xf32>
    %cst_107 = arith.constant 0.000000e+00 : f32
    %263 = vector.broadcast %cst_107 : f32 to vector<8x1xf32>
    %264 = arith.subf %263, %262 : vector<8x1xf32>
    %c0_108 = arith.constant 0 : index
    %c0_109 = arith.constant 0 : index
    %265 = vector.load %arg17[%c0_108, %c0_109] : memref<8x256xf32, #tpu.memory_space<vmem>>, vector<8x32xf32>
    tpu.vector_store %arg17[%c0_108, %c0_109], %215 {strides = array<i32>} : memref<8x256xf32, #tpu.memory_space<vmem>>, vector<8x32xf32>,
    %c0_110 = arith.constant 0 : index
    %c32 = arith.constant 32 : index
    %266 = vector.load %arg17[%c0_110, %c32] : memref<8x256xf32, #tpu.memory_space<vmem>>, vector<8x32xf32>
    tpu.vector_store %arg17[%c0_110, %c32], %223 {strides = array<i32>} : memref<8x256xf32, #tpu.memory_space<vmem>>, vector<8x32xf32>,
    %c0_111 = arith.constant 0 : index
    %c64 = arith.constant 64 : index
    %267 = vector.load %arg17[%c0_111, %c64] : memref<8x256xf32, #tpu.memory_space<vmem>>, vector<8x32xf32>
    tpu.vector_store %arg17[%c0_111, %c64], %98 {strides = array<i32>} : memref<8x256xf32, #tpu.memory_space<vmem>>, vector<8x32xf32>,
    %c0_112 = arith.constant 0 : index
    %c96 = arith.constant 96 : index
    %268 = vector.load %arg17[%c0_112, %c96] : memref<8x256xf32, #tpu.memory_space<vmem>>, vector<8x32xf32>
    tpu.vector_store %arg17[%c0_112, %c96], %162 {strides = array<i32>} : memref<8x256xf32, #tpu.memory_space<vmem>>, vector<8x32xf32>,
    %269 = tpu.concatenate %229, %258, %235, %259, %264 in 1 : vector<8x3xf32>, vector<8x5xf32>, vector<8x5xf32>, vector<8x1xf32>, vector<8x1xf32> -> vector<8x15xf32>
    %c0_113 = arith.constant 0 : index
    %c128 = arith.constant 128 : index
    %270 = vector.load %arg17[%c0_113, %c128] : memref<8x256xf32, #tpu.memory_space<vmem>>, vector<8x15xf32>
    tpu.vector_store %arg17[%c0_113, %c128], %269 {strides = array<i32>} : memref<8x256xf32, #tpu.memory_space<vmem>>, vector<8x15xf32>,
    return
  }
  func.func @transform_0(%arg0: i32) -> (i32, i32) {
    %c0_i32 = arith.constant 0 : i32
    %c0_i32_0 = arith.constant 0 : i32
    return %arg0, %c0_i32 : i32, i32
  }
  func.func @transform_1(%arg0: i32) -> (i32, i32, i32) {
    %c0_i32 = arith.constant 0 : i32
    %c0_i32_0 = arith.constant 0 : i32
    %c0_i32_1 = arith.constant 0 : i32
    %c0_i32_2 = arith.constant 0 : i32
    return %c0_i32, %c0_i32_0, %c0_i32_1 : i32, i32, i32
  }
  func.func @transform_2(%arg0: i32) -> (i32, i32) {
    %c0_i32 = arith.constant 0 : i32
    %c0_i32_0 = arith.constant 0 : i32
    %c0_i32_1 = arith.constant 0 : i32
    return %c0_i32, %c0_i32_0 : i32, i32
  }
  func.func @transform_3(%arg0: i32) -> (i32, i32, i32) {
    %c0_i32 = arith.constant 0 : i32
    %c0_i32_0 = arith.constant 0 : i32
    %c0_i32_1 = arith.constant 0 : i32
    %c0_i32_2 = arith.constant 0 : i32
    return %c0_i32, %c0_i32_0, %c0_i32_1 : i32, i32, i32
  }
  func.func @transform_4(%arg0: i32) -> (i32, i32) {
    %c0_i32 = arith.constant 0 : i32
    %c0_i32_0 = arith.constant 0 : i32
    %c0_i32_1 = arith.constant 0 : i32
    return %c0_i32, %c0_i32_0 : i32, i32
  }
  func.func @transform_5(%arg0: i32) -> (i32, i32, i32) {
    %c0_i32 = arith.constant 0 : i32
    %c0_i32_0 = arith.constant 0 : i32
    %c0_i32_1 = arith.constant 0 : i32
    %c0_i32_2 = arith.constant 0 : i32
    return %c0_i32, %c0_i32_0, %c0_i32_1 : i32, i32, i32
  }
  func.func @transform_6(%arg0: i32) -> (i32, i32) {
    %c0_i32 = arith.constant 0 : i32
    %c0_i32_0 = arith.constant 0 : i32
    %c0_i32_1 = arith.constant 0 : i32
    return %c0_i32, %c0_i32_0 : i32, i32
  }
  func.func @transform_7(%arg0: i32) -> (i32, i32) {
    %c0_i32 = arith.constant 0 : i32
    %c0_i32_0 = arith.constant 0 : i32
    %c0_i32_1 = arith.constant 0 : i32
    return %c0_i32, %c0_i32_0 : i32, i32
  }
  func.func @transform_8(%arg0: i32) -> (i32, i32, i32) {
    %c0_i32 = arith.constant 0 : i32
    %c0_i32_0 = arith.constant 0 : i32
    %c0_i32_1 = arith.constant 0 : i32
    %c0_i32_2 = arith.constant 0 : i32
    return %c0_i32, %c0_i32_0, %c0_i32_1 : i32, i32, i32
  }
  func.func @transform_9(%arg0: i32) -> (i32, i32) {
    %c0_i32 = arith.constant 0 : i32
    %c0_i32_0 = arith.constant 0 : i32
    %c0_i32_1 = arith.constant 0 : i32
    return %c0_i32, %c0_i32_0 : i32, i32
  }
  func.func @transform_10(%arg0: i32) -> (i32, i32) {
    %c0_i32 = arith.constant 0 : i32
    %c0_i32_0 = arith.constant 0 : i32
    %c0_i32_1 = arith.constant 0 : i32
    return %c0_i32, %c0_i32_0 : i32, i32
  }
  func.func @transform_11(%arg0: i32) -> (i32, i32) {
    %c0_i32 = arith.constant 0 : i32
    %c0_i32_0 = arith.constant 0 : i32
    %c0_i32_1 = arith.constant 0 : i32
    return %c0_i32, %c0_i32_0 : i32, i32
  }
  func.func @transform_12(%arg0: i32) -> (i32, i32) {
    %c0_i32 = arith.constant 0 : i32
    %c0_i32_0 = arith.constant 0 : i32
    %c0_i32_1 = arith.constant 0 : i32
    return %c0_i32, %c0_i32_0 : i32, i32
  }
  func.func @transform_13(%arg0: i32) -> (i32, i32) {
    %c0_i32 = arith.constant 0 : i32
    %c0_i32_0 = arith.constant 0 : i32
    %c0_i32_1 = arith.constant 0 : i32
    return %c0_i32, %c0_i32_0 : i32, i32
  }
  func.func @transform_14(%arg0: i32) -> (i32, i32) {
    %c0_i32 = arith.constant 0 : i32
    %c0_i32_0 = arith.constant 0 : i32
    %c0_i32_1 = arith.constant 0 : i32
    return %c0_i32, %c0_i32_0 : i32, i32
  }
  func.func @transform_15(%arg0: i32) -> (i32, i32) {
    %c0_i32 = arith.constant 0 : i32
    %c0_i32_0 = arith.constant 0 : i32
    %c0_i32_1 = arith.constant 0 : i32
    return %c0_i32, %c0_i32_0 : i32, i32
  }
  func.func @transform_16(%arg0: i32) -> (i32, i32) {
    %c0_i32 = arith.constant 0 : i32
    %c0_i32_0 = arith.constant 0 : i32
    return %arg0, %c0_i32 : i32, i32
  }
}

</mosaic_0001>

<bundles_post_ra>
// kernel: tpu_custom_call.1
= control target key start
LH: loop header
LB: loop body
LE: loop exit
PB: predicated region body
PF: predicated region fallthrough
CT: control target
= control target key end

     0   :  { %s2008_s0 = inlined_call_operand.hbm [shape: f32[8,128], index: 0, kind: input, shape index: {}]   ;;  %s2009_s1 = inlined_call_operand.hbm [shape: bf16[2,16,32], index: 1, kind: input, shape index: {}]   ;;  %s2010_s2 = inlined_call_operand.hbm [shape: f32[2,32], index: 2, kind: input, shape index: {}]   ;;  %s2011_s3 = inlined_call_operand.vmem [shape: bf16[2,32,32], index: 3, kind: input, shape index: {}]   ;;  %s2012_s4 = inlined_call_operand.hbm [shape: f32[2,32], index: 4, kind: input, shape index: {}]   ;;  %s2013_s5 = inlined_call_operand.hbm [shape: bf16[2,32,96], index: 5, kind: input, shape index: {}]   ;;  %s2014_s6 = inlined_call_operand.hbm [shape: f32[2,96], index: 6, kind: input, shape index: {}]   ;;  %s2015_s7 = inlined_call_operand.hbm [shape: f32[2,32], index: 7, kind: input, shape index: {}]   ;;  %s2016_s8 = inlined_call_operand.vmem [shape: bf16[2,32,96], index: 8, kind: input, shape index: {}]   ;;  %s2017_s9 = inlined_call_operand.hbm [shape: f32[2,96], index: 9, kind: input, shape index: {}]   ;;  %s2018_s10 = inlined_call_operand.vmem [shape: f32[2,32], index: 10, kind: input, shape index: {}]   ;;  %s2019_s11 = inlined_call_operand.vmem [shape: f32[4,32], index: 11, kind: input, shape index: {}]   ;;  %s2020_s12 = inlined_call_operand.vmem [shape: bf16[32,3], index: 12, kind: input, shape index: {}]   ;;  %s2021_s13 = inlined_call_operand.vmem [shape: f32[1,3], index: 13, kind: input, shape index: {}]   ;;  %s2022_s14 = inlined_call_operand.vmem [shape: bf16[32,5], index: 14, kind: input, shape index: {}]   ;;  %s2023_s15 = inlined_call_operand.vmem [shape: f32[1,5], index: 15, kind: input, shape index: {}]   ;;  %s2024_s16 = inlined_call_operand.hbm [shape: f32[8,256], index: 16, kind: output, shape index: {}]  }
   0x1   :  { %2027 = sst [smem:[#allocation23_spill]] %s2008_s0 }
   0x2   :  { %2028 = sst [smem:[#allocation24_spill]] %s2024_s16 }
   0x3   :  { %21 = vsyncpa [#allocation3], 0 }
   0x4   :  { %22 = vsyncpa [#allocation6], 0 }
   0x5   :  { %23 = vsyncpa [#allocation9], 0 }
   0x6   :  { %24 = vsyncpa [#allocation12], 0 }
   0x7   :  { %25 = vsyncpa [#allocation15], 0 }
   0x8   :  { %26 = vsyncpa [#allocation4], 0  ;;  %s1585_s21 = smov [#allocation5]   ;;  %s1375_s25 = scalar_lea.hbm %s2009_s1, 256 }
   0x9   :  { %s42_s22 = sshll.u32 %s1585_s21, 4  ;;  %p1376_p0 = scmp.ne.s32.totalorder %s2009_s1, %s1375_s25  ;;  %s43_s22 = int_to_ptr.vmem [resolvable:$true] %s42_s22 }
   0xa   :  { %p1379_p1 = scmp.lt.u32.totalorder %s1375_s25, %s2009_s1 }
   0xc   :  { %p1381_p2 = pnand %p1379_p1, %p1376_p0 }
   0xe   :  { %1384 = shalt.err (!%p1381_p2)
}
   0xf   :  { %s1385_s30 = scalar_lea.vmem %s43_s22, 256  ;;  %p1390_p4 = scmp.lt.s32.totalorder %s43_s22, %s43_s22 }
  0x10   :  { %p1386_p3 = scmp.ne.s32.totalorder %s43_s22, %s1385_s30  ;;  %p1391_p5 = scmp.lt.s32.totalorder %s1385_s30, %s1385_s30 }
  0x12   :  { %p1392_p6 = por %p1391_p5, %p1390_p4 }
  0x14   :  { %p1393_p7 = pnand %p1392_p6, %p1386_p3 }
  0x16   :  { %1396 = shalt.err (!%p1393_p7)
}
  0x17   :  { %s1586_s0 = smov 64   ;;  %s1587_s17 = smov 4  }
  0x18   :  { %48 = dma.hbm_to_vmem [thread:$0]  %s2009_s1, 256, %s43_s22, [#allocation6], %s1586_s0, %s1586_s0, %s1587_s17  }
  0x19   :  { %s1588_s20 = smov [#allocation8]   ;;  %s1589_s23 = smov [#allocation11]  }
  0x1a   :  { %s67_s21 = sshll.u32 %s1588_s20, 4  ;;  %s89_s24 = sshll.u32 %s1589_s23, 4  ;;  %s68_s21 = int_to_ptr.vmem [resolvable:$true] %s67_s21  ;;  %s90_s24 = int_to_ptr.vmem [resolvable:$true] %s89_s24 }
  0x1b   :  { %s1397_s27 = scalar_lea.hbm %s2012_s4, 32 }
  0x1c   :  { %p1398_p8 = scmp.ne.s32.totalorder %s2012_s4, %s1397_s27  ;;  %p1401_p9 = scmp.lt.u32.totalorder %s1397_s27, %s2012_s4 }
  0x1e   :  { %p1403_p10 = pnand %p1401_p9, %p1398_p8 }
  0x20   :  { %1406 = shalt.err (!%p1403_p10)
}
  0x21   :  { %s1407_s1 = scalar_lea.vmem %s68_s21, 32  ;;  %p1412_p12 = scmp.lt.s32.totalorder %s68_s21, %s68_s21 }
  0x22   :  { %p1408_p11 = scmp.ne.s32.totalorder %s68_s21, %s1407_s1  ;;  %p1413_p13 = scmp.lt.s32.totalorder %s1407_s1, %s1407_s1 }
  0x24   :  { %p1414_p0 = por %p1413_p13, %p1412_p12 }
  0x26   :  { %p1415_p1 = pnand %p1414_p0, %p1408_p11 }
  0x28   :  { %1418 = shalt.err (!%p1415_p1)
}
  0x29   :  { %70 = dma.hbm_to_vmem [thread:$0]  %s2012_s4, 32, %s68_s21, [#allocation9]  }
  0x2a   :  { %s1419_s23 = scalar_lea.hbm %s2014_s6, 32 }
  0x2b   :  { %p1420_p2 = scmp.ne.s32.totalorder %s2014_s6, %s1419_s23  ;;  %p1423_p3 = scmp.lt.u32.totalorder %s1419_s23, %s2014_s6 }
  0x2d   :  { %p1425_p4 = pnand %p1423_p3, %p1420_p2 }
  0x2f   :  { %1428 = shalt.err (!%p1425_p4)
}
  0x30   :  { %s1429_s28 = scalar_lea.vmem %s90_s24, 32  ;;  %p1434_p6 = scmp.lt.s32.totalorder %s90_s24, %s90_s24 }
  0x31   :  { %p1430_p5 = scmp.ne.s32.totalorder %s90_s24, %s1429_s28  ;;  %p1435_p7 = scmp.lt.s32.totalorder %s1429_s28, %s1429_s28 }
  0x33   :  { %p1436_p8 = por %p1435_p7, %p1434_p6 }
  0x35   :  { %p1437_p9 = pnand %p1436_p8, %p1430_p5 }
  0x37   :  { %1440 = shalt.err (!%p1437_p9)
}
  0x38   :  { %92 = dma.hbm_to_vmem [thread:$0]  %s2014_s6, 32, %s90_s24, [#allocation12]  }
  0x39   :  { %s1590_s29 = smov [#allocation2]   ;;  %s1591_s1 = smov [#allocation7]  }
  0x3a   :  { %s33_s30 = sshll.u32 %s1590_s29, 4  ;;  %s55_s22 = sshll.u32 %s1591_s1, 4  ;;  %s34_s30 = int_to_ptr.vmem [resolvable:$true] %s33_s30  ;;  %s56_s22 = int_to_ptr.vmem [resolvable:$true] %s55_s22 }
  0x3b   :  { %s2029_s20 = sld [smem:[#allocation23_spill]] }
  0x41   :  { %s1441_s23 = scalar_lea.hbm %s2029_s20, 128 }
  0x42   :  { %p1442_p10 = scmp.ne.s32.totalorder %s2029_s20, %s1441_s23  ;;  %p1445_p11 = scmp.lt.u32.totalorder %s1441_s23, %s2029_s20 }
  0x44   :  { %p1447_p12 = pnand %p1445_p11, %p1442_p10 }
  0x46   :  { %1450 = shalt.err (!%p1447_p12)
}
  0x47   :  { %s1451_s6 = scalar_lea.vmem %s34_s30, 128  ;;  %p1456_p0 = scmp.lt.s32.totalorder %s34_s30, %s34_s30 }
  0x48   :  { %p1452_p13 = scmp.ne.s32.totalorder %s34_s30, %s1451_s6  ;;  %p1457_p1 = scmp.lt.s32.totalorder %s1451_s6, %s1451_s6 }
  0x4a   :  { %p1458_p2 = por %p1457_p1, %p1456_p0 }
  0x4c   :  { %p1459_p3 = pnand %p1458_p2, %p1452_p13 }
  0x4e   :  { %1462 = shalt.err (!%p1459_p3)
}
  0x4f   :  { %36 = dma.hbm_to_vmem [thread:$0]  %s2029_s20, 128, %s34_s30, [#allocation3]  }
  0x50   :  { %s1463_s29 = scalar_lea.hbm %s2010_s2, 32 }
  0x51   :  { %p1464_p4 = scmp.ne.s32.totalorder %s2010_s2, %s1463_s29  ;;  %p1467_p5 = scmp.lt.u32.totalorder %s1463_s29, %s2010_s2 }
  0x53   :  { %p1469_p6 = pnand %p1467_p5, %p1464_p4 }
  0x55   :  { %1472 = shalt.err (!%p1469_p6)
}
  0x56   :  { %s1473_s16 = scalar_lea.vmem %s56_s22, 32  ;;  %p1478_p8 = scmp.lt.s32.totalorder %s56_s22, %s56_s22 }
  0x57   :  { %p1474_p7 = scmp.ne.s32.totalorder %s56_s22, %s1473_s16  ;;  %p1479_p9 = scmp.lt.s32.totalorder %s1473_s16, %s1473_s16 }
  0x59   :  { %p1480_p10 = por %p1479_p9, %p1478_p8 }
  0x5b   :  { %p1481_p11 = pnand %p1480_p10, %p1474_p7 }
  0x5d   :  { %1484 = shalt.err (!%p1481_p11)
}
  0x5e   :  { %58 = dma.hbm_to_vmem [thread:$0]  %s2010_s2, 32, %s56_s22, [#allocation6]  }
  0x5f   :  { %s1592_s25 = smov [#allocation10]   ;;  %s1593_s27 = smov [#allocation13]  }
  0x60   :  { %s76_s26 = sshll.u32 %s1592_s25, 4  ;;  %s99_s6 = sshll.u32 %s1593_s27, 4  ;;  %s77_s26 = int_to_ptr.vmem [resolvable:$true] %s76_s26  ;;  %s100_s6 = int_to_ptr.vmem [resolvable:$true] %s99_s6 }
  0x61   :  { %s1485_s4 = scalar_lea.hbm %s2013_s5, 512 }
  0x62   :  { %p1486_p12 = scmp.ne.s32.totalorder %s2013_s5, %s1485_s4  ;;  %p1489_p13 = scmp.lt.u32.totalorder %s1485_s4, %s2013_s5 }
  0x64   :  { %p1491_p0 = pnand %p1489_p13, %p1486_p12 }
  0x66   :  { %1494 = shalt.err (!%p1491_p0)
}
  0x67   :  { %s1495_s2 = scalar_lea.vmem %s77_s26, 512  ;;  %p1500_p2 = scmp.lt.s32.totalorder %s77_s26, %s77_s26 }
  0x68   :  { %p1496_p1 = scmp.ne.s32.totalorder %s77_s26, %s1495_s2  ;;  %p1501_p3 = scmp.lt.s32.totalorder %s1495_s2, %s1495_s2 }
  0x6a   :  { %p1502_p4 = por %p1501_p3, %p1500_p2 }
  0x6c   :  { %p1503_p5 = pnand %p1502_p4, %p1496_p1 }
  0x6e   :  { %1506 = shalt.err (!%p1503_p5)
}
  0x6f   :  { %82 = dma.hbm_to_vmem [thread:$0]  %s2013_s5, 512, %s77_s26, [#allocation9], %s1586_s0, %s1586_s0, %s1587_s17  }
  0x70   :  { %s1507_s30 = scalar_lea.hbm %s2015_s7, 32 }
  0x71   :  { %p1508_p6 = scmp.ne.s32.totalorder %s2015_s7, %s1507_s30  ;;  %p1511_p7 = scmp.lt.u32.totalorder %s1507_s30, %s2015_s7 }
  0x73   :  { %p1513_p8 = pnand %p1511_p7, %p1508_p6 }
  0x75   :  { %1516 = shalt.err (!%p1513_p8)
}
  0x76   :  { %s1517_s28 = scalar_lea.vmem %s100_s6, 32  ;;  %p1522_p10 = scmp.lt.s32.totalorder %s100_s6, %s100_s6 }
  0x77   :  { %p1518_p9 = scmp.ne.s32.totalorder %s100_s6, %s1517_s28  ;;  %p1523_p11 = scmp.lt.s32.totalorder %s1517_s28, %s1517_s28 }
  0x79   :  { %p1524_p12 = por %p1523_p11, %p1522_p10 }
  0x7b   :  { %p1525_p13 = pnand %p1524_p12, %p1518_p9 }
  0x7d   :  { %1528 = shalt.err (!%p1525_p13)
}
  0x7e   :  { %102 = dma.hbm_to_vmem [thread:$0]  %s2015_s7, 32, %s100_s6, [#allocation12]  }
  0x7f   :  { %s1594_s26 = smov [#allocation14]   ;;  %s1529_s1 = scalar_lea.hbm %s2017_s9, 32 }
  0x80   :  { %s111_s4 = sshll.u32 %s1594_s26, 4  ;;  %p1530_p0 = scmp.ne.s32.totalorder %s2017_s9, %s1529_s1  ;;  %s112_s4 = int_to_ptr.vmem [resolvable:$true] %s111_s4 }
  0x81   :  { %p1533_p1 = scmp.lt.u32.totalorder %s1529_s1, %s2017_s9 }
  0x83   :  { %p1535_p2 = pnand %p1533_p1, %p1530_p0 }
  0x85   :  { %1538 = shalt.err (!%p1535_p2)
}
  0x86   :  { %s1539_s23 = scalar_lea.vmem %s112_s4, 32  ;;  %p1544_p4 = scmp.lt.s32.totalorder %s112_s4, %s112_s4 }
  0x87   :  { %p1540_p3 = scmp.ne.s32.totalorder %s112_s4, %s1539_s23  ;;  %p1545_p5 = scmp.lt.s32.totalorder %s1539_s23, %s1539_s23 }
  0x89   :  { %p1546_p6 = por %p1545_p5, %p1544_p4 }
  0x8b   :  { %p1547_p7 = pnand %p1546_p6, %p1540_p3 }
  0x8d   :  { %1550 = shalt.err (!%p1547_p7)
}
  0x8e   :  { %114 = dma.hbm_to_vmem [thread:$0]  %s2017_s9, 32, %s112_s4, [#allocation15]  }
  0x8f   :  { %1573 = dma.done.wait [#allocation3], 128  }
  0x90   :  { %1574 = vsyncadd [#allocation3], 4294967168 }
  0x91   :  { %1575 = dma.done.wait [#allocation6], 288  }
  0x92   :  { %1576 = vsyncadd [#allocation6], 4294967008 }
  0x93   :  { %1577 = dma.done.wait [#allocation9], 544  }
  0x94   :  { %1578 = vsyncadd [#allocation9], 4294966752 }
  0x95   :  { %1579 = dma.done.wait [#allocation12], 64  }
  0x96   :  { %1580 = vsyncadd [#allocation12], 4294967232 }
  0x97   :  { %1581 = dma.done.wait [#allocation15], 32  }
  0x98   :  { %1582 = vsyncadd [#allocation15], 4294967264  ;;  %vm153_vm0 = vcmask 130048   ;;  %v152_v0 = vld [vmem:[#allocation2] sm:$0xff]  ;;  %v1331_v7 = vld [vmem:[#allocation5] sm:$0xff]   ;;  %v1595_v8 = vmov 0.0  }
  0x99   :  { %v154_v1 = vsel %vm153_vm0, %v152_v0, 0.0  ;;  %1232 = vmatprep.subr.bf16.mxu0 %v1595_v8  ;;  %vm1596_vm1 = vmmov 0   ;;  %1238 = vmatprep.subr.bf16.mxu1 %v1595_v8  ;;  %v1333_v9 = vld [vmem:[%s2011_s3] sm:$0xff]   ;;  %v1597_v10 = vmov 80   ;;  %v1332_v16 = vld [vmem:[#allocation5 + $0x8] sm:$0xff]   ;;  %v1334_v18 = vld [vmem:[%s2011_s3 + $0x8] sm:$0xff]  }
  0x9a   :  { %155 = vadd.xlane.f32.xlu0 %v154_v1  ;;  %1234 = vmatprep.mubr.msk.bf16.mxu0 %vm1596_vm1, %v1595_v8  ;;  %s1598_s25 = smov 112   ;;  %s1599_s27 = smov 80   ;;  %v1341_v22 = vld [vmem:[#allocation10] sm:$0xff]   ;;  %v1147_v23 = vld [vmem:[#allocation7] ss:$0 sm:$0xff]  ;;  %vm248_vm2 = vcmask 261120  }
  0x9b   :  { %1233 = vmatpush3.bf16.msra.mxu0 %v1331_v7  ;;  %1242 = vmatprep.mubr.msk.bf16.mxu1 %vm1596_vm1, %v1595_v8  ;;  %v1335_v30 = vld [vmem:[%s2011_s3 + $0x10] sm:$0xff]   ;;  %v1154_v32 = vld [vmem:[#allocation7 + $0x1] ss:$0 sm:$0xff]  ;;  %v1342_v47 = vld [vmem:[#allocation10 + $0x8] sm:$0xff]   ;;  %s1601_s22 = smov 16   ;;  %s1602_s9 = smov 32  }
  0x9c   :  { %1246 = vmatprep.subr.bf16.mxu0 %v1595_v8  ;;  %1329 = vset.pattern.permute.xlu1 %v1597_v10  ;;  %v1336_v34 = vld [vmem:[%s2011_s3 + $0x18] sm:$0xff]   ;;  %v1337_v40 = vld [vmem:[#allocation10 + $0x10] sm:$0xff]   ;;  %v1343_v55 = vld [vmem:[%s2016_s8] sm:$0xff]   ;;  %vm1049_vm3 = vcmask 39936   ;;  %s1604_s1 = smov 3   ;;  %vm1098_vm7 = vcmask 523520  }
  0x9d   :  { %1330 = vset.pattern.permute.xlu0 %v1597_v10  ;;  %417 = vperm.xlu1 %1329, %v152_v0   ;;  %v1338_v42 = vld [vmem:[#allocation10 + $0x18] sm:$0xff]   ;;  %v1344_v59 = vld [vmem:[%s2016_s8 + $0x8] sm:$0xff]   ;;  %vm1103_vm8 = vcmask 785920   ;;  %vm1118_vm9 = vcmask 23552   ;;  %vm1120_vm10 = vcmask 64512   ;;  %vm1122_vm11 = vcmask 105472  }
  0x9e   :  { %1239 = vmatpush3.bf16.msra.mxu1 %v1333_v9  ;;  %v1339_v44 = vld [vmem:[%s2016_s8 + $0x10] sm:$0xff]   ;;  %v1340_v45 = vld [vmem:[%s2016_s8 + $0x18] sm:$0xff]   ;;  %s1600_s8 = smov 96   ;;  %vm1124_vm12 = vcmask 113664   ;;  %vm1108_vm13 = vcmask 1048320   ;;  %vm1126_vm14 = vcmask 121856  }
  0x9f   :  { %1240 = vmatprep.subr.bf16.mxu1 %v1595_v8  ;;  %v1150_v48 = vld [vmem:[#allocation8] ss:$0 sm:$0xff]  ;;  %v1161_v57 = vld [vmem:[#allocation8 + $0x1] ss:$0 sm:$0xff] }
  0xa2   :  { %1241 = vmatpush3.bf16.msra.mxu1 %v1334_v18 }
  0xa3   :  { %1252 = vmatprep.subr.bf16.mxu1 %v1595_v8 }
 0x11c   :  { %v418_v19 = vpop.permute.xlu1 %417 }
 0x11d   :  { %v1817_v20 = vmul.f32 %v418_v19, %v152_v0 }
 0x11f   :  { %v491_v21 = vpack.c.bf16 %v1817_v20, %v1817_v20 }
 0x121   :  { %498 = vrot.lane.b32.xlu1 %v491_v21, %s1598_s25 }
 0x127   :  { %v156_v2 = vpop.xlane.xlu0 %155 }
 0x128   :  { %v158_v3 = vmul.f32 0.0625, %v156_v2 }
 0x12a   :  { %v159_v4 = vsub.f32 %v152_v0, %v158_v3 }
 0x12c   :  { %v160_v5 = vmul.f32 %v159_v4, %v159_v4 }
 0x12e   :  { %v161_v6 = vsel %vm153_vm0, %v160_v5, 0.0 }
 0x12f   :  { %162 = vadd.xlane.f32.xlu0 %v161_v6  ;;  %v1184_v6 = vld [vmem:[#allocation14 + $0x1] ss:$0 sm:$0xff] }
 0x145   :  { %702 = vrot.lane.b32.xlu0 %v491_v21, %s1599_s27 }
 0x193   :  { %v499_v43 = vpop.permute.xlu1 %498 }
 0x1bc   :  { %v163_v11 = vpop.xlane.xlu0 %162 }
 0x1bd   :  { %v164_v12 = vmul.f32 0.0625, %v163_v11 }
 0x1bf   :  { %v165_v13 = vadd.f32 1e-05, %v164_v12 }
 0x1c0   :  { %v703_v46 = vpop.permute.xlu0 %702 }
 0x1c1   :  { %1349 = vrsqrt.f32 %v165_v13 }
 0x1cb   :  { %v1350_v14 = vpop.eup %1349 }
 0x1cc   :  { %v167_v15 = vmul.f32 %v1350_v14, %v159_v4 }
 0x1ce   :  { %v170_v17 = vpack.c.bf16 %v167_v15, %v167_v15 }
 0x1d0   :  { %1235 = vmatmul.mubr.msk.bf16.vlgmr.msra.gmra.mrb[0].mxu0 %vm153_vm0, %v170_v17 }
 0x1d1   :  { %1247 = vmatpush3.bf16.msra.mxu0 %v1332_v16  ;;  %1248 = vmatprep.mubr.msk.bf16.mxu0 %vm1596_vm1, %v1595_v8 }
 0x1d2   :  { %1260 = vmatprep.subr.bf16.mxu0 %v1595_v8 }
 0x1d8   :  { %1249 = vmatmul.mubr.msk.bf16.vlgmr.msra.gmra.mrb[4].mxu0 %vm153_vm0, %v170_v17  ;;  %v1176_v17 = vld [vmem:[#allocation14] ss:$0 sm:$0xff] }
 0x1d9   :  { %1264 = vmatprep.mubr.msk.bf16.mxu0 %vm1596_vm1, %v1595_v8  ;;  %1261 = vmatpush3.bf16.msra.mxu0 %v1341_v22 }
 0x1da   :  { %1262 = vmatprep.subr.bf16.mxu0 %v1595_v8 }
 0x1dd   :  { %1263 = vmatpush3.bf16.msra.mxu0 %v1342_v47 }
 0x1de   :  { %1276 = vmatprep.subr.bf16.mxu0 %v1595_v8 }
 0x2a3   :  { %v219_v24 = vpop.f32.mrb[0].mxu0 }
 0x2a4   :  { %v220_v25 = vadd.f32 %v1147_v23, %v219_v24  ;;  %v1236_v26 = vpop.f32.mrb[1].mxu0 }
 0x2a5   :  { %v222_v27 = vpop.f32.mrb[2].mxu0 }
 0x2a6   :  { %v225_v28 = vmax.f32 %v220_v25, 0.0  ;;  %v1237_v29 = vpop.f32.mrb[3].mxu0 }
 0x2a8   :  { %v230_v31 = vpack.c.bf16 %v225_v28, %v225_v28 }
 0x2aa   :  { %1243 = vmatmul.mubr.msk.bf16.vlgmr.msra.gmra.mrb[0].mxu1 %vm248_vm2, %v230_v31 }
 0x2ab   :  { %1253 = vmatpush3.bf16.msra.mxu1 %v1335_v30  ;;  %v341_v33 = vpop.f32.mrb[4].mxu0  ;;  %1256 = vmatprep.mubr.msk.bf16.mxu1 %vm1596_vm1, %v1595_v8 }
 0x2ac   :  { %v342_v35 = vadd.f32 %v1154_v32, %v341_v33  ;;  %v1250_v36 = vpop.f32.mrb[5].mxu0  ;;  %1254 = vmatprep.subr.bf16.mxu1 %v1595_v8 }
 0x2ad   :  { %v344_v37 = vpop.f32.mrb[6].mxu0 }
 0x2ae   :  { %v347_v38 = vmax.f32 %v342_v35, 0.0  ;;  %v1251_v39 = vpop.f32.mrb[7].mxu0 }
 0x2af   :  { %1255 = vmatpush3.bf16.msra.mxu1 %v1336_v34 }
 0x2b0   :  { %v353_v41 = vpack.c.bf16 %v347_v38, %v347_v38  ;;  %1268 = vmatprep.subr.bf16.mxu1 %v1595_v8 }
 0x2b2   :  { %1257 = vmatmul.mubr.msk.bf16.vlgmr.msra.gmra.mrb[4].mxu1 %vm248_vm2, %v353_v41 }
 0x2b3   :  { %1269 = vmatpush3.bf16.msra.mxu1 %v1337_v40  ;;  %1272 = vmatprep.mubr.msk.bf16.mxu1 %vm1596_vm1, %v1595_v8  ;;  %v1169_v40 = vld [vmem:[#allocation11 + $0x1] ss:$0 sm:$0xff] }
 0x2b4   :  { %1270 = vmatprep.subr.bf16.mxu1 %v1595_v8 }
 0x2b7   :  { %1271 = vmatpush3.bf16.msra.mxu1 %v1338_v42  ;;  %v1165_v42 = vld [vmem:[#allocation11] ss:$0 sm:$0xff] }
 0x2b8   :  { %1284 = vmatprep.subr.bf16.mxu1 %v1595_v8 }
 0x2ba   :  { %1273 = vmatmul.mubr.msk.bf16.vlgmr.msra.gmra.mrb[8].mxu1 %vm248_vm2, %v499_v43 }
 0x2bb   :  { %1285 = vmatpush3.bf16.msra.mxu1 %v1339_v44  ;;  %1288 = vmatprep.mubr.msk.bf16.mxu1 %vm1596_vm1, %v1595_v8 }
 0x2bc   :  { %1286 = vmatprep.subr.bf16.mxu1 %v1595_v8 }
 0x2bf   :  { %1287 = vmatpush3.bf16.msra.mxu1 %v1340_v45 }
 0x2c0   :  { %1300 = vmatprep.subr.bf16.mxu1 %v1595_v8 }
 0x2c2   :  { %1289 = vmatmul.mubr.msk.bf16.vlgmr.msra.gmra.mrb[12].mxu1 %vm248_vm2, %v703_v46 }
 0x2c3   :  { %1304 = vmatprep.mubr.msk.bf16.mxu1 %vm1596_vm1, %v1595_v8 }
 0x37d   :  { %v286_v49 = vpop.f32.mrb[0].mxu1 }
 0x37e   :  { %v287_v50 = vadd.f32 %v1150_v48, %v286_v49  ;;  %v1244_v51 = vpop.f32.mrb[1].mxu1 }
 0x37f   :  { %v289_v52 = vpop.f32.mrb[2].mxu1 }
 0x380   :  { %v292_v53 = vmax.f32 %v287_v50, 0.0  ;;  %v1245_v54 = vpop.f32.mrb[3].mxu1 }
 0x382   :  { %v425_v56 = vpack.c.bf16 %v292_v53, %v292_v53 }
 0x384   :  { %1265 = vmatmul.mubr.msk.bf16.vlgmr.msra.gmra.mrb[8].mxu0 %vm248_vm2, %v425_v56 }
 0x385   :  { %1277 = vmatpush3.bf16.msra.mxu0 %v1343_v55  ;;  %v408_v58 = vpop.f32.mrb[4].mxu1  ;;  %1280 = vmatprep.mubr.msk.bf16.mxu0 %vm1596_vm1, %v1595_v8 }
 0x386   :  { %v409_v60 = vadd.f32 %v1161_v57, %v408_v58  ;;  %v1258_v61 = vpop.f32.mrb[5].mxu1  ;;  %1278 = vmatprep.subr.bf16.mxu0 %v1595_v8 }
 0x387   :  { %v411_v62 = vpop.f32.mrb[6].mxu1 }
 0x388   :  { %v414_v63 = vmax.f32 %v409_v60, 0.0  ;;  %v1259_v0 = vpop.f32.mrb[7].mxu1 }
 0x389   :  { %1279 = vmatpush3.bf16.msra.mxu0 %v1344_v59 }
 0x38a   :  { %v631_v1 = vpack.c.bf16 %v414_v63, %v414_v63  ;;  %1292 = vmatprep.subr.bf16.mxu0 %v1595_v8 }
 0x38c   :  { %1281 = vmatmul.mubr.msk.bf16.vlgmr.msra.gmra.mrb[12].mxu0 %vm248_vm2, %v631_v1 }
 0x38d   :  { %v549_v2 = vpop.f32.mrb[8].mxu1  ;;  %1296 = vmatprep.mubr.msk.bf16.mxu0 %vm1596_vm1, %v1595_v8 }
 0x38e   :  { %v1274_v3 = vpop.f32.mrb[9].mxu1  ;;  %v550_v41 = vadd.f32 %v1169_v40, %v549_v2 }
 0x38f   :  { %v552_v4 = vpop.f32.mrb[10].mxu1 }
 0x390   :  { %v1275_v5 = vpop.f32.mrb[11].mxu1  ;;  %v1189_v4 = vld [vmem:[%s2018_s10] ss:$0 sm:$0xff] }
 0x395   :  { %v753_v7 = vpop.f32.mrb[12].mxu1 }
 0x396   :  { %v754_v9 = vadd.f32 %v1184_v6, %v753_v7  ;;  %v1290_v10 = vpop.f32.mrb[13].mxu1 }
 0x397   :  { %v756_v11 = vpop.f32.mrb[14].mxu1  ;;  %v1345_v10 = vld [vmem:[%s2022_s14] sm:$0xff]  }
 0x398   :  { %v1291_v12 = vpop.f32.mrb[15].mxu1  ;;  %767 = vrot.lane.b32.xlu1 %v754_v9, %s1586_s0  ;;  %1301 = vmatpush3.bf16.msra.mxu1 %v1345_v10 }
 0x399   :  { %v1174_v12 = vld [vmem:[#allocation13] ss:$0 sm:$0xff]  ;;  %1302 = vmatprep.subr.bf16.mxu1 %v1595_v8 }
 0x40a   :  { %v768_v29 = vpop.permute.xlu1 %767 }
 0x457   :  { %v480_v13 = vpop.f32.mrb[8].mxu0 }
 0x458   :  { %v1266_v14 = vpop.f32.mrb[9].mxu0  ;;  %v481_v43 = vadd.f32 %v1165_v42, %v480_v13  ;;  %v1346_v13 = vld [vmem:[%s2022_s14 + $0x8] sm:$0xff]   ;;  %v1347_v42 = vld [vmem:[%s2020_s12] sm:$0xff]  }
 0x459   :  { %v483_v15 = vpop.f32.mrb[10].mxu0  ;;  %1303 = vmatpush3.bf16.msra.mxu1 %v1346_v13  ;;  %v1175_v14 = vld [vmem:[#allocation13 + $0x1] ss:$0 sm:$0xff]  ;;  %1293 = vmatpush3.bf16.msra.mxu0 %v1347_v42  ;;  %v1194_v13 = vld [vmem:[%s2019_s11 + $0x3] ss:$0 sm:$0xff] }
 0x45a   :  { %v1267_v16 = vpop.f32.mrb[11].mxu0  ;;  %v555_v44 = vadd.f32 %v550_v41, %v481_v43  ;;  %1294 = vmatprep.subr.bf16.mxu0 %v1595_v8 }
 0x45c   :  { %v1173_v45 = vmul.f32 -1.442695, %v555_v44 }
 0x45f   :  { %v686_v18 = vpop.f32.mrb[12].mxu0 }
 0x460   :  { %v687_v19 = vadd.f32 %v1176_v17, %v686_v18  ;;  %v1282_v21 = vpop.f32.mrb[13].mxu0 }
 0x461   :  { %v689_v22 = vpop.f32.mrb[14].mxu0 }
 0x462   :  { %v759_v23 = vadd.f32 %v754_v9, %v687_v19  ;;  %v1283_v24 = vpop.f32.mrb[15].mxu0 }
 0x464   :  { %v1188_v25 = vmul.f32 -1.442695, %v759_v23 }
 0x466   :  { %1351 = vpow2.f32 %v1188_v25 }
 0x470   :  { %v1352_v26 = vpop.eup %1351 }
 0x471   :  { %v763_v27 = vadd.f32 1.0, %v1352_v26 }
 0x473   :  { %1353 = vrcp.f32 %v763_v27 }
 0x47d   :  { %v1354_v28 = vpop.eup %1353 }
 0x47e   :  { %v770_v30 = vmul.f32 %v1354_v28, %v768_v29  ;;  %v777_v35 = vsub.f32 1.0, %v1354_v28 }
 0x480   :  { %772 = vrot.lane.b32.xlu1 %v770_v30, %s1586_s0 }
 0x4f2   :  { %v773_v31 = vpop.permute.xlu1 %772 }
 0x4f3   :  { %v775_v32 = vadd.f32 %v773_v31, %v687_v19 }
 0x4f5   :  { %1355 = vtanh.f32 %v775_v32 }
 0x4f6   :  { %1357 = vpow2.f32 %v1173_v45 }
 0x4ff   :  { %v1356_v33 = vpop.eup %1355 }
 0x500   :  { %779 = vrot.lane.b32.xlu1 %v1356_v33, %s1600_s8  ;;  %v1358_v46 = vpop.eup %1357 }
 0x501   :  { %v559_v47 = vadd.f32 1.0, %v1358_v46 }
 0x503   :  { %1359 = vrcp.f32 %v559_v47 }
 0x504   :  { %783 = vrot.lane.b32.xlu1 %v1817_v20, %s1598_s25 }
 0x50d   :  { %v1360_v50 = vpop.eup %1359 }
 0x50e   :  { %v573_v63 = vsub.f32 1.0, %v1360_v50 }
 0x572   :  { %v780_v34 = vpop.permute.xlu1 %779 }
 0x573   :  { %v782_v37 = vmul.f32 %v780_v34, %v777_v35  ;;  %v1199_v34 = vld [vmem:[%s2023_s15] ss:$0 sm:$0xff] }
 0x576   :  { %v784_v36 = vpop.permute.xlu1 %783 }
 0x577   :  { %v786_v38 = vmul.f32 %v1354_v28, %v784_v36 }
 0x579   :  { %v1873_v39 = vadd.f32 %v786_v38, %v782_v37 }
 0x57b   :  { %789 = vrot.lane.b32.xlu1 %v1873_v39, %s1600_s8 }
 0x57f   :  { %563 = vrot.lane.b32.xlu1 %v550_v41, %s1586_s0 }
 0x5ed   :  { %v790_v48 = vpop.permute.xlu1 %789 }
 0x5ee   :  { %v792_v49 = vsel %vm248_vm2, %v790_v48, 0.0 }
 0x5ef   :  { %793 = vadd.xlane.f32.xlu0 %v792_v49 }
 0x5f1   :  { %v564_v51 = vpop.permute.xlu1 %563 }
 0x5f2   :  { %v566_v52 = vmul.f32 %v1360_v50, %v564_v51 }
 0x5f4   :  { %568 = vrot.lane.b32.xlu1 %v566_v52, %s1586_s0 }
 0x666   :  { %v569_v53 = vpop.permute.xlu1 %568 }
 0x667   :  { %v571_v54 = vadd.f32 %v569_v53, %v481_v43  ;;  %v1348_v43 = vld [vmem:[%s2020_s12 + $0x8] sm:$0xff]  }
 0x668   :  { %1295 = vmatpush3.bf16.msra.mxu0 %v1348_v43 }
 0x669   :  { %1361 = vtanh.f32 %v571_v54 }
 0x673   :  { %v1362_v59 = vpop.eup %1361 }
 0x67c   :  { %v794_v55 = vpop.xlane.xlu0 %793 }
 0x67d   :  { %v795_v56 = vmul.f32 0.03125, %v794_v55 }
 0x67f   :  { %v796_v57 = vsub.f32 %v1873_v39, %v795_v56 }
 0x681   :  { %v797_v58 = vmul.f32 %v796_v57, %v796_v57 }
 0x683   :  { %799 = vrot.lane.b32.xlu1 %v797_v58, %s1600_s8 }
 0x687   :  { %575 = vrot.lane.b32.xlu1 %v1362_v59, %s1600_s8 }
 0x68b   :  { %580 = vrot.lane.b32.xlu1 %v1817_v20, %s1601_s22  ;;  %v1190_v20 = vld [vmem:[%s2018_s10 + $0x1] ss:$0 sm:$0xff] }
 0x6f5   :  { %v800_v60 = vpop.permute.xlu1 %799 }
 0x6f6   :  { %v802_v61 = vsel %vm248_vm2, %v800_v60, 0.0 }
 0x6f7   :  { %803 = vadd.xlane.f32.xlu1 %v802_v61 }
 0x6f9   :  { %v576_v62 = vpop.permute.xlu1 %575 }
 0x6fa   :  { %v578_v1 = vmul.f32 %v576_v62, %v573_v63 }
 0x6fd   :  { %v581_v0 = vpop.permute.xlu1 %580 }
 0x6fe   :  { %v583_v2 = vmul.f32 %v1360_v50, %v581_v0  ;;  %v1065_v0 = vlaneseq }
 0x700   :  { %v1885_v3 = vadd.f32 %v583_v2, %v578_v1  ;;  %v1946_v2 = vand.u32 127, %v1065_v0 }
 0x702   :  { %586 = vrot.lane.b32.xlu0 %v1885_v3, %s1600_s8 }
 0x706   :  { %815 = vrot.lane.b32.xlu0 %v1189_v4, %s1602_s9 }
 0x708   :  { %825 = vrot.lane.b32.xlu1 %v1190_v20, %s1602_s9 }
 0x774   :  { %v587_v5 = vpop.permute.xlu0 %586 }
 0x775   :  { %v589_v6 = vsel %vm248_vm2, %v587_v5, 0.0 }
 0x776   :  { %590 = vadd.xlane.f32.xlu0 %v589_v6 }
 0x778   :  { %v816_v16 = vpop.permute.xlu0 %815 }
 0x784   :  { %v804_v7 = vpop.xlane.xlu1 %803 }
 0x785   :  { %v805_v9 = vmul.f32 0.03125, %v804_v7 }
 0x787   :  { %v806_v11 = vadd.f32 1e-05, %v805_v9 }
 0x788   :  { %v826_v18 = vpop.permute.xlu1 %825 }
 0x789   :  { %1363 = vrsqrt.f32 %v806_v11  ;;  %v1191_v11 = vld [vmem:[%s2019_s11] ss:$0 sm:$0xff] }
 0x78c   :  { %613 = vrot.lane.b32.xlu0 %v1174_v12, %s1602_s9  ;;  %v1193_v12 = vld [vmem:[%s2019_s11 + $0x2] ss:$0 sm:$0xff] }
 0x790   :  { %623 = vrot.lane.b32.xlu0 %v1175_v14, %s1602_s9 }
 0x793   :  { %v1364_v15 = vpop.eup %1363 }
 0x794   :  { %v808_v17 = vmul.f32 %v1364_v15, %v796_v57 }
 0x796   :  { %v818_v19 = vmul.f32 %v816_v16, %v808_v17 }
 0x798   :  { %v828_v21 = vadd.f32 %v826_v18, %v818_v19 }
 0x79a   :  { %830 = vrot.lane.b32.xlu0 %v828_v21, %s1600_s8  ;;  %v983_v22 = vpack.c.bf16 %v828_v21, %v828_v21 }
 0x79c   :  { %992 = vrot.lane.b32.xlu1 %v983_v22, %s1600_s8 }
 0x803   :  { %v591_v23 = vpop.xlane.xlu0 %590 }
 0x804   :  { %v593_v24 = vmul.f32 0.03125, %v591_v23 }
 0x806   :  { %v594_v25 = vsub.f32 %v1885_v3, %v593_v24 }
 0x807   :  { %v614_v26 = vpop.permute.xlu0 %613 }
 0x808   :  { %v595_v27 = vmul.f32 %v594_v25, %v594_v25 }
 0x80a   :  { %597 = vrot.lane.b32.xlu1 %v595_v27, %s1600_s8 }
 0x80b   :  { %v624_v28 = vpop.permute.xlu0 %623 }
 0x80e   :  { %v993_v29 = vpop.permute.xlu1 %992 }
 0x80f   :  { %v831_v30 = vpop.permute.xlu0 %830  ;;  %1305 = vmatmul.mubr.msk.bf16.vlgmr.msra.gmra.mrb[16].mxu1 %vm248_vm2, %v993_v29 }
 0x810   :  { %v833_v31 = vsel %vm248_vm2, %v831_v30, 0.0  ;;  %v1192_v30 = vld [vmem:[%s2019_s11 + $0x1] ss:$0 sm:$0xff]  ;;  %s1603_s11 = smov 8  }
 0x811   :  { %834 = vadd.xlane.f32.xlu0 %v833_v31 }
 0x87c   :  { %v598_v32 = vpop.permute.xlu1 %597 }
 0x87d   :  { %v600_v33 = vsel %vm248_vm2, %v598_v32, 0.0 }
 0x87e   :  { %601 = vadd.xlane.f32.xlu1 %v600_v33 }
 0x89e   :  { %v835_v52 = vpop.xlane.xlu0 %834 }
 0x8e2   :  { %v1043_v35 = vpop.f32.mrb[16].mxu1 }
 0x8e3   :  { %v1917_v36 = vadd.f32 %v1199_v34, %v1043_v35  ;;  %v1306_v37 = vpop.f32.mrb[17].mxu1 }
 0x8e4   :  { %v1046_v38 = vpop.f32.mrb[18].mxu1 }
 0x8e5   :  { %v1307_v40 = vpop.f32.mrb[19].mxu1  ;;  %v1050_v41 = vsel %vm1049_vm3, %v1917_v36, -inf }
 0x8e6   :  { %1051 = vmax.xlane.f32.xlu0 %v1050_v41 }
 0x90b   :  { %v602_v44 = vpop.xlane.xlu1 %601 }
 0x90c   :  { %v603_v45 = vmul.f32 0.03125, %v602_v44 }
 0x90e   :  { %v604_v46 = vadd.f32 1e-05, %v603_v45 }
 0x910   :  { %1365 = vrsqrt.f32 %v604_v46 }
 0x91a   :  { %v1366_v47 = vpop.eup %1365 }
 0x91b   :  { %v606_v48 = vmul.f32 %v1366_v47, %v594_v25 }
 0x91d   :  { %v616_v49 = vmul.f32 %v614_v26, %v606_v48 }
 0x91f   :  { %v626_v50 = vadd.f32 %v624_v28, %v616_v49 }
 0x921   :  { %837 = vrot.lane.b32.xlu1 %v626_v50, %s1600_s8  ;;  %v913_v51 = vpack.c.bf16 %v626_v50, %v626_v50 }
 0x923   :  { %922 = vrot.lane.b32.xlu0 %v913_v51, %s1600_s8 }
 0x973   :  { %v1930_v53 = vpop.xlane.xlu0 %1051 }
 0x974   :  { %v1053_v1 = vsub.f32 %v1917_v36, %v1930_v53  ;;  %vm1067_vm4 = vcmp.ge.f32.partialorder %v1917_v36, %v1930_v53 }
 0x975   :  { %v1068_v20 = vsel %vm1067_vm4, %v1946_v2, 5 }
 0x976   :  { %v1054_v4 = vmul.f32 1.442695, %v1053_v1  ;;  %v1069_v5 = vsel %vm1049_vm3, %v1068_v20, 2147483647 }
 0x977   :  { %v1071_v6 = vshra.s32 %v1069_v5, 16  ;;  %v1070_v23 = vand.u32 65535, %v1069_v5 }
 0x978   :  { %1367 = vpow2.f32 %v1054_v4 }
 0x979   :  { %v1073_v7 = vcvt.s32.f32 %v1071_v6  ;;  %v1072_v25 = vcvt.s32.f32 %v1070_v23 }
 0x982   :  { %v1368_v9 = vpop.eup %1367 }
 0x983   :  { %v1056_v10 = vsel %vm1049_vm3, %v1368_v9, 0.0 }
 0x993   :  { %v838_v54 = vpop.permute.xlu1 %837 }
 0x994   :  { %v840_v55 = vsel %vm248_vm2, %v838_v54, 0.0 }
 0x995   :  { %841 = vadd.xlane.f32.xlu1 %v840_v55  ;;  %v923_v56 = vpop.permute.xlu0 %922 }
 0x996   :  { %1297 = vmatmul.mubr.msk.bf16.vlgmr.msra.gmra.mrb[16].mxu0 %vm248_vm2, %v923_v56 }
 0xa22   :  { %v842_v57 = vpop.xlane.xlu1 %841 }
 0xa23   :  { %v843_v58 = vadd.f32 %v842_v57, %v835_v52 }
 0xa25   :  { %v844_v59 = vmul.f32 0.015625, %v843_v58 }
 0xa27   :  { %v1934_v60 = vsub.f32 %v828_v21, %v844_v59  ;;  %v1936_v61 = vsub.f32 %v626_v50, %v844_v59 }
 0xa29   :  { %v847_v62 = vmul.f32 %v1934_v60, %v1934_v60  ;;  %v855_v63 = vmul.f32 %v1936_v61, %v1936_v61 }
 0xa2b   :  { %849 = vrot.lane.b32.xlu1 %v847_v62, %s1600_s8  ;;  %857 = vrot.lane.b32.xlu0 %v855_v63, %s1600_s8 }
 0xa4a   :  { %1074 = vmin.xlane.f32.xlu0 %v1073_v7 }
 0xa4f   :  { %1057 = vadd.xlane.f32.xlu1 %v1056_v10 }
 0xa60   :  { %874 = vrot.lane.b32.xlu1 %v1191_v11, %s1602_s9 }
 0xa64   :  { %895 = vrot.lane.b32.xlu1 %v1193_v12, %s1602_s9 }
 0xa68   :  { %905 = vrot.lane.b32.xlu1 %v1194_v13, %s1602_s9 }
 0xa69   :  { %v1965_v14 = vpop.f32.mrb[16].mxu0 }
 0xa6a   :  { %v1298_v15 = vpop.f32.mrb[17].mxu0 }
 0xa6b   :  { %v976_v16 = vpop.f32.mrb[18].mxu0 }
 0xa6c   :  { %v1299_v17 = vpop.f32.mrb[19].mxu0 }
 0xa9d   :  { %v850_v18 = vpop.permute.xlu1 %849  ;;  %v858_v21 = vpop.permute.xlu0 %857 }
 0xa9e   :  { %v852_v19 = vsel %vm248_vm2, %v850_v18, 0.0  ;;  %v860_v22 = vsel %vm248_vm2, %v858_v21, 0.0 }
 0xa9f   :  { %853 = vadd.xlane.f32.xlu0 %v852_v19 }
 0xaa3   :  { %861 = vadd.xlane.f32.xlu0 %v860_v22 }
 0xad7   :  { %v1075_v24 = vpop.xlane.xlu0 %1074 }
 0xad8   :  { %vm1076_vm5 = vcmp.eq.f32.partialorder %v1073_v7, %v1075_v24  ;;  %v1081_v50 = vcvt.f32.s32 %v1075_v24 }
 0xad9   :  { %v1077_v26 = vsel %vm1076_vm5, %v1072_v25, inf }
 0xada   :  { %1078 = vmin.xlane.f32.xlu0 %v1077_v26  ;;  %v1082_v54 = vshll.u32 %v1081_v50, 16 }
 0xadc   :  { %v1058_v27 = vpop.xlane.xlu1 %1057 }
 0xadd   :  { %1369 = vlog2.f32 %v1058_v27 }
 0xae0   :  { %v875_v47 = vpop.permute.xlu1 %874 }
 0xae4   :  { %v896_v57 = vpop.permute.xlu1 %895 }
 0xae7   :  { %v1370_v28 = vpop.eup %1369 }
 0xae8   :  { %v1060_v29 = vmul.f32 0.6931472, %v1370_v28 }
 0xaea   :  { %v1974_v31 = vadd.f32 %v1060_v29, %v1930_v53 }
 0xaec   :  { %v1062_v32 = vsub.f32 %v1917_v36, %v1974_v31  ;;  %v1087_v1 = vsub.f32 %v1930_v53, %v1974_v31 }
 0xaee   :  { %v1063_v33 = vmul.f32 1.442695, %v1062_v32 }
 0xaf0   :  { %884 = vrot.lane.b32.xlu0 %v1192_v30, %s1602_s9  ;;  %1371 = vpow2.f32 %v1063_v33 }
 0xafa   :  { %v1372_v34 = vpop.eup %1371 }
 0xafb   :  { %v1088_v35 = vmul.f32 %v1372_v34, %v1062_v32 }
 0xafd   :  { %v1089_v37 = vsel %vm1049_vm3, %v1088_v35, 0.0 }
 0xb0f   :  { %1090 = vadd.xlane.f32.xlu0 %v1089_v37 }
 0xb2c   :  { %v854_v38 = vpop.xlane.xlu0 %853 }
 0xb30   :  { %v862_v40 = vpop.xlane.xlu0 %861 }
 0xb31   :  { %v863_v41 = vadd.f32 %v862_v40, %v854_v38 }
 0xb33   :  { %v864_v42 = vmul.f32 0.015625, %v863_v41 }
 0xb35   :  { %v865_v43 = vadd.f32 1e-05, %v864_v42 }
 0xb37   :  { %1373 = vrsqrt.f32 %v865_v43 }
 0xb41   :  { %v1374_v44 = vpop.eup %1373 }
 0xb42   :  { %v867_v45 = vmul.f32 %v1374_v44, %v1934_v60  ;;  %v888_v58 = vmul.f32 %v1374_v44, %v1936_v61  ;;  %v906_v60 = vpop.permute.xlu1 %905 }
 0xb44   :  { %v877_v48 = vmul.f32 %v875_v47, %v867_v45  ;;  %v898_v59 = vmul.f32 %v896_v57, %v888_v58 }
 0xb46   :  { %v908_v62 = vadd.f32 %v906_v60, %v898_v59 }
 0xb67   :  { %v1079_v46 = vpop.xlane.xlu0 %1078 }
 0xb68   :  { %v1080_v52 = vcvt.f32.s32 %v1079_v46 }
 0xb6a   :  { %v1083_v55 = vadd.s32 %v1082_v54, %v1080_v52 }
 0xb6b   :  { %v885_v49 = vpop.permute.xlu0 %884 }
 0xb6c   :  { %v887_v51 = vadd.f32 %v885_v49, %v877_v48  ;;  %vm1084_vm6 = vcmp.eq.s32.totalorder %v1946_v2, %v1083_v55 }
 0xb6d   :  { %v1203_v56 = vsel %vm1084_vm6, 1.0, %v1595_v8  ;;  %v1195_v8 = vld [vmem:[%s2021_s13] ss:$0 sm:$0xff] }
 0xb6e   :  { %1094 = vrot.lane.b32.xlu1 %v887_v51, %s1600_s8 }
 0xb72   :  { %1115 = vrot.lane.b32.xlu1 %v1917_v36, %s1603_s11 }
 0xb76   :  { %1100 = vrot.lane.b32.xlu1 %v1885_v3, %s1602_s9 }
 0xb7a   :  { %1111 = vrot.lane.b32.xlu1 %v1203_v56, %s1604_s1 }
 0xb7e   :  { %1105 = vrot.lane.b32.xlu1 %v1873_v39, %s1586_s0  ;;  %v974_v39 = vadd.f32 %v1195_v8, %v1965_v14  ;;  %s1605_s0 = smov [#allocation16]  }
 0xb7f   :  { %s1134_s8 = sshll.u32 %s1605_s0, 4  ;;  %s1135_s8 = int_to_ptr.vmem [resolvable:$true] %s1134_s8 }
 0xb80   :  { %s1551_s13 = scalar_lea.vmem %s1135_s8, 256  ;;  %p1556_p9 = scmp.lt.s32.totalorder %s1135_s8, %s1135_s8 }
 0xb81   :  { %p1552_p8 = scmp.ne.s32.totalorder %s1135_s8, %s1551_s13  ;;  %p1557_p10 = scmp.lt.s32.totalorder %s1551_s13, %s1551_s13 }
 0xb83   :  { %p1558_p11 = por %p1557_p10, %p1556_p9 }
 0xb85   :  { %p1559_p12 = pnand %p1558_p11, %p1552_p8 }
 0xb9c   :  { %v1091_v61 = vpop.xlane.xlu0 %1090 }
 0xb9d   :  { %v1092_v4 = vsub.f32 0.0, %v1091_v61 }
 0xbe0   :  { %v1095_v36 = vpop.permute.xlu1 %1094 }
 0xbe1   :  { %1097 = vst.msk [vmem:[#allocation16] sm:$0xff] %vm248_vm2, %v1095_v36 }
 0xbe2   :  { %1099 = vst.msk [vmem:[#allocation16] sm:$0xff] %vm1098_vm7, %v908_v62 }
 0xbe4   :  { %v1116_v3 = vpop.permute.xlu1 %1115 }
 0xbe8   :  { %v1101_v63 = vpop.permute.xlu1 %1100 }
 0xbe9   :  { %1104 = vst.msk [vmem:[#allocation16] sm:$0xff] %vm1103_vm8, %v1101_v63 }
 0xbec   :  { %v1112_v0 = vpop.permute.xlu1 %1111 }
 0xbed   :  { %v1119_v2 = vsel %vm1118_vm9, %v974_v39, %v1112_v0 }
 0xbee   :  { %v1121_v20 = vsel %vm1120_vm10, %v1119_v2, %v1116_v3 }
 0xbef   :  { %v1123_v5 = vsel %vm1122_vm11, %v1121_v20, %v1087_v1 }
 0xbf0   :  { %v1106_v6 = vpop.permute.xlu1 %1105  ;;  %v1125_v7 = vsel %vm1124_vm12, %v1123_v5, %v1092_v4 }
 0xbf1   :  { %1109 = vst.msk [vmem:[#allocation16] sm:$0xff] %vm1108_vm13, %v1106_v6 }
 0xbf2   :  { %1127 = vst.msk [vmem:[#allocation16 + $0x8] sm:$0xff] %vm1126_vm14, %v1125_v7 }
 0xbf3   :  { %1562 = shalt.err (!%p1559_p12)
}
 0xbf4   :  { %s2030_s23 = sld [smem:[#allocation24_spill]] }
 0xbfa   :  { %s1563_s7 = scalar_lea.hbm %s2030_s23, 256 }
 0xbfb   :  { %p1564_p13 = scmp.ne.s32.totalorder %s2030_s23, %s1563_s7  ;;  %p1567_p0 = scmp.lt.u32.totalorder %s1563_s7, %s2030_s23 }
 0xbfd   :  { %p1569_p1 = pnand %p1567_p0, %p1564_p13 }
 0xbff   :  { %1572 = shalt.err (!%p1569_p1)
}
 0xc00   :  { %1137 = dma.vmem_to_hbm [thread:$0]  %s1135_s8, 256, %s2030_s23, [#allocation4]  }
 0xc01   :  { %1583 = dma.done.wait [#allocation4], 256  }
 0xc02   :  { %1584 = vsyncadd [#allocation4], 4294967040 }
 0xc03   :  { %1141 = vsyncpa [#allocation3], 1 }
 0xc04   :  { %1142 = vsyncpa [#allocation6], 1 }
 0xc05   :  { %1143 = vsyncpa [#allocation9], 1 }
 0xc06   :  { %1144 = vsyncpa [#allocation12], 1 }
 0xc07   :  { %1145 = vsyncpa [#allocation15], 1 }
 0xc08   :  { %1146 = vsyncpa [#allocation4], 1 }

</bundles_post_ra>
